<compile_context>
chip_gen: v6e
topology: v6e:2x2x1
jax: 0.10.0
libtpu: 0.0.40
codegen_flags: <defaults>
</compile_context>

<pallas_src>
import math

import jax
import jax.numpy as jnp
from jax import lax
from jax.experimental import pallas as pl
from jax.experimental.pallas import tpu as pltpu

# ----------------------------- model config (small, lane-dense) -------------
BATCH = 2
SEQ = 16
HIDDEN = 128                 # lane-dense (multiple of 128)
NUM_HEADS = 4
HEAD_DIM = HIDDEN // NUM_HEADS
INTERMEDIATE = 256
NUM_LAYERS = 2
VOCAB = 128
MAX_POS = 32                 # >= SEQ + padding_idx + 1
PAD_IDX = 1                  # RoBERTa padding_idx
NUM_LABELS = 2
LN_EPS = 1e-5
F32 = jnp.float32
BF16 = jnp.bfloat16


# ----------------------------- kernel helpers --------------------------------
def _ln(x, g, b, eps=LN_EPS):
    mu = jnp.mean(x, axis=-1, keepdims=True)
    var = jnp.mean((x - mu) * (x - mu), axis=-1, keepdims=True)
    return (x - mu) * lax.rsqrt(var + eps) * g + b


def _gelu_erf(x):  # exact (erf) GELU, as in HF RoBERTa
    return 0.5 * x * (1.0 + lax.erf(x * jnp.float32(1.0 / math.sqrt(2.0))))


# ----------------------------- per-(batch, layer) kernel ---------------------
def _roberta_layer_kernel(
    emb_ref, mask_ref,
    emb_ln_g_ref, emb_ln_b_ref,
    wqkv_ref, bqkv_ref,
    wo_ref, bo_ref, ln1_g_ref, ln1_b_ref,
    wi_ref, bi_ref, wo2_ref, bo2_ref, ln2_g_ref, ln2_b_ref,
    cls_w_ref, cls_b_ref,
    z_ref,                      # out: pooled tanh activation [1, HIDDEN]
    h_ref,                      # VMEM scratch [SEQ, HIDDEN] f32, carried across layers
):
    l = pl.program_id(1)
    scale = jnp.float32(1.0 / math.sqrt(HEAD_DIM))

    # Embedding LayerNorm only on the first layer visit of this batch.
    @pl.when(l == 0)
    def _():
        h_ref[...] = _ln(emb_ref[...].astype(F32),
                         emb_ln_g_ref[...].astype(F32),
                         emb_ln_b_ref[...].astype(F32))

    h = h_ref[...]                                              # [S, H] f32

    # Additive mask broadcast to [S, S] ONCE (outside the head loop).
    mask_ss = jnp.broadcast_to(mask_ref[...].astype(F32), (SEQ, SEQ))

    # ---- fused QKV projection: one [S,H] @ [H,3H] MXU matmul ----
    qkv = jnp.dot(h.astype(BF16), wqkv_ref[...],
                  preferred_element_type=F32) + bqkv_ref[...].astype(F32)
    # 128-lane-aligned splits (cheap vreg-group slices).
    q = qkv[:, :HIDDEN]
    k = qkv[:, HIDDEN:2 * HIDDEN]
    v = qkv[:, 2 * HIDDEN:]

    # ---- attention: per-head 2D MXU matmuls, context kept in vregs ----
    ctx_heads = []
    for hh in range(NUM_HEADS):
        c0 = hh * HEAD_DIM
        q_h = q[:, c0:c0 + HEAD_DIM].astype(BF16)
        k_h = k[:, c0:c0 + HEAD_DIM].astype(BF16)
        v_h = v[:, c0:c0 + HEAD_DIM].astype(BF16)

        # scores = Q @ K^T (contract head_dim of both)
        s = lax.dot_general(q_h, k_h, (((1,), (1,)), ((), ())),
                            preferred_element_type=F32) * scale
        s = s + mask_ss
        s = s - jnp.max(s, axis=-1, keepdims=True)
        p = jnp.exp(s)
        p = p * pl.reciprocal(jnp.sum(p, axis=-1, keepdims=True), approx=True)
        ctx_heads.append(jnp.dot(p.astype(BF16), v_h,
                                 preferred_element_type=F32))   # [S, Dh]
    ctx = jnp.concatenate(ctx_heads, axis=-1)                   # [S, H], stays in vregs

    # ---- attention output projection + residual + LayerNorm (fused) ----
    attn = jnp.dot(ctx.astype(BF16), wo_ref[...],
                   preferred_element_type=F32) + bo_ref[...].astype(F32)
    h = _ln(attn + h, ln1_g_ref[...].astype(F32), ln1_b_ref[...].astype(F32))

    # ---- FFN (exact GELU) + residual + LayerNorm (fused) ----
    ff = jnp.dot(h.astype(BF16), wi_ref[...],
                 preferred_element_type=F32) + bi_ref[...].astype(F32)
    ff = _gelu_erf(ff)
    ff2 = jnp.dot(ff.astype(BF16), wo2_ref[...],
                  preferred_element_type=F32) + bo2_ref[...].astype(F32)
    h = _ln(ff2 + h, ln2_g_ref[...].astype(F32), ln2_b_ref[...].astype(F32))

    h_ref[...] = h                                              # carry to next layer

    # ---- classifier dense + tanh, only after the last layer, only CLS rows ----
    @pl.when(l == pl.num_programs(1) - 1)
    def _():
        rows = h[0:8, :]        # one sublane-aligned tile; row 0 is the <s>/CLS token
        z = jnp.tanh(jnp.dot(rows.astype(BF16), cls_w_ref[...],
                             preferred_element_type=F32)
                     + cls_b_ref[...].astype(F32))
        z_ref[...] = z[0:1, :].astype(z_ref.dtype)              # lane-dense [1, 128] store


# ----------------------------- pallas_call wrapper ---------------------------
@jax.jit
def roberta_forward(params, input_ids, attention_mask):
    """Returns classification logits [B, NUM_LABELS] (the `x['logits']` path)."""
    B, S = input_ids.shape

    # Embeddings (gather is glue, plain JAX).
    mask_i = attention_mask.astype(jnp.int32)
    position_ids = jnp.cumsum(mask_i, axis=1) * mask_i + PAD_IDX   # RoBERTa offset
    word = jnp.take(params["word_emb"], input_ids, axis=0)         # [B, S, H]
    pos = jnp.take(params["pos_emb"], position_ids, axis=0)        # [B, S, H]
    typ = params["type_emb"][0][None, None, :]                     # [1, 1, H]
    emb = (word + pos + typ).astype(F32)                           # [B, S, H]

    # Additive attention mask: 0 where attended, -1e9 where masked.  [B, 1, S]
    mask_add = ((1.0 - attention_mask.astype(F32)) * jnp.float32(-1e9))[:, None, :]

    # TODO(synk): dropout omitted (inference / eval semantics); hidden_states hook
    # output not returned (default forward path returns logits only).

    inputs = (
        emb, mask_add,
        params["emb_ln_g"], params["emb_ln_b"],
        params["wqkv"], params["bqkv"],
        params["wo"], params["bo"], params["ln1_g"], params["ln1_b"],
        params["wi"], params["bi"], params["wo2"], params["bo2"],
        params["ln2_g"], params["ln2_b"],
        params["cls_w"], params["cls_b"],
    )

    def batch_spec(shape):      # leading dim indexed by batch grid axis, squeezed
        n = len(shape) - 1
        return pl.BlockSpec((None,) + tuple(shape[1:]),
                            lambda b, l: (b,) + (0,) * n)

    def layer_spec(shape):      # leading dim indexed by layer grid axis, squeezed
        n = len(shape) - 1
        return pl.BlockSpec((None,) + tuple(shape[1:]),
                            lambda b, l: (l,) + (0,) * n)

    def shared_spec(shape):     # whole array every iteration
        n = len(shape)
        return pl.BlockSpec(tuple(shape), lambda b, l: (0,) * n)

    in_specs = [
        batch_spec(emb.shape), batch_spec(mask_add.shape),
        shared_spec(params["emb_ln_g"].shape), shared_spec(params["emb_ln_b"].shape),
        layer_spec(params["wqkv"].shape), layer_spec(params["bqkv"].shape),
        layer_spec(params["wo"].shape), layer_spec(params["bo"].shape),
        layer_spec(params["ln1_g"].shape), layer_spec(params["ln1_b"].shape),
        layer_spec(params["wi"].shape), layer_spec(params["bi"].shape),
        layer_spec(params["wo2"].shape), layer_spec(params["bo2"].shape),
        layer_spec(params["ln2_g"].shape), layer_spec(params["ln2_b"].shape),
        shared_spec(params["cls_w"].shape), shared_spec(params["cls_b"].shape),
    ]

    z = pl.pallas_call(
        _roberta_layer_kernel,
        out_shape=jax.ShapeDtypeStruct((B, 1, HIDDEN), F32),
        grid=(B, NUM_LAYERS),
        in_specs=in_specs,
        out_specs=pl.BlockSpec((None, 1, HIDDEN), lambda b, l: (b, 0, 0)),
        scratch_shapes=[pltpu.VMEM((SEQ, HIDDEN), F32)],
        compiler_params=pltpu.CompilerParams(
            dimension_semantics=("parallel", "arbitrary")),
    )(*inputs)

    # Tiny [H, NUM_LABELS] out_proj stays in the wrapper (keeps kernel stores lane-dense).
    z = z.reshape(B, HIDDEN)
    logits = jnp.dot(z.astype(BF16), params["out_w"],
                     preferred_element_type=F32) + params["out_b"]
    return logits


# ----------------------------- parameter init --------------------------------
def init_params(key):
    ks = iter(jax.random.split(key, 32))

    def nrm(shape, dtype=F32):
        return (0.02 * jax.random.normal(next(ks), shape, dtype=F32)).astype(dtype)

    p = {}
    p["word_emb"] = nrm((VOCAB, HIDDEN))
    p["pos_emb"] = nrm((MAX_POS, HIDDEN))
    p["type_emb"] = nrm((1, HIDDEN))
    p["emb_ln_g"] = jnp.ones((1, HIDDEN), F32)
    p["emb_ln_b"] = jnp.zeros((1, HIDDEN), F32)

    L = NUM_LAYERS
    p["wqkv"] = nrm((L, HIDDEN, 3 * HIDDEN), BF16)   # concat Wq|Wk|Wv
    p["bqkv"] = nrm((L, 1, 3 * HIDDEN))
    p["wo"] = nrm((L, HIDDEN, HIDDEN), BF16)
    p["bo"] = nrm((L, 1, HIDDEN))
    p["ln1_g"] = jnp.ones((L, 1, HIDDEN), F32)
    p["ln1_b"] = jnp.zeros((L, 1, HIDDEN), F32)
    p["wi"] = nrm((L, HIDDEN, INTERMEDIATE), BF16)
    p["bi"] = nrm((L, 1, INTERMEDIATE))
    p["wo2"] = nrm((L, INTERMEDIATE, HIDDEN), BF16)
    p["bo2"] = nrm((L, 1, HIDDEN))
    p["ln2_g"] = jnp.ones((L, 1, HIDDEN), F32)
    p["ln2_b"] = jnp.zeros((L, 1, HIDDEN), F32)

    p["cls_w"] = nrm((HIDDEN, HIDDEN), BF16)
    p["cls_b"] = nrm((1, HIDDEN))
    p["out_w"] = nrm((HIDDEN, NUM_LABELS), BF16)
    p["out_b"] = nrm((1, NUM_LABELS))
    return p


# ----------------------------- pure-JAX reference ----------------------------
def roberta_forward_ref(params, input_ids, attention_mask):
    B, S = input_ids.shape
    mask_i = attention_mask.astype(jnp.int32)
    position_ids = jnp.cumsum(mask_i, axis=1) * mask_i + PAD_IDX
    word = jnp.take(params["word_emb"], input_ids, axis=0)
    pos = jnp.take(params["pos_emb"], position_ids, axis=0)
    typ = params["type_emb"][0][None, None, :]
    emb = (word + pos + typ).astype(F32).reshape(B * S, HIDDEN)

    def ln(x, g, b):
        mu = jnp.mean(x, -1, keepdims=True)
        var = jnp.mean((x - mu) ** 2, -1, keepdims=True)
        return (x - mu) * lax.rsqrt(var + LN_EPS) * g + b

    bf = lambda t: t.astype(BF16)  # noqa: E731  (match kernel matmul precision)

    h = ln(emb, params["emb_ln_g"], params["emb_ln_b"])
    mask_add = ((1.0 - attention_mask.astype(F32)) * -1e9)[:, None, None, :]

    for l in range(NUM_LAYERS):
        qkv = jnp.dot(bf(h), params["wqkv"][l],
                      preferred_element_type=F32) + params["bqkv"][l]

        def heads(t):
            return t.reshape(B, S, NUM_HEADS, HEAD_DIM).transpose(0, 2, 1, 3)

        q = heads(qkv[:, :HIDDEN])
        k = heads(qkv[:, HIDDEN:2 * HIDDEN])
        v = heads(qkv[:, 2 * HIDDEN:])
        s = jnp.einsum("bhqd,bhkd->bhqk", bf(q), bf(k),
                       preferred_element_type=F32) / math.sqrt(HEAD_DIM) + mask_add
        p = jax.nn.softmax(s, axis=-1)
        ctx = jnp.einsum("bhqk,bhkd->bhqd", bf(p), bf(v),
                         preferred_element_type=F32)
        ctx = ctx.transpose(0, 2, 1, 3).reshape(B * S, HIDDEN)

        attn = jnp.dot(bf(ctx), params["wo"][l],
                       preferred_element_type=F32) + params["bo"][l]
        h = ln(attn + h, params["ln1_g"][l], params["ln1_b"][l])

        ff = jnp.dot(bf(h), params["wi"][l],
                     preferred_element_type=F32) + params["bi"][l]
        ff = 0.5 * ff * (1.0 + lax.erf(ff * jnp.float32(1.0 / math.sqrt(2.0))))
        ff2 = jnp.dot(bf(ff), params["wo2"][l],
                      preferred_element_type=F32) + params["bo2"][l]
        h = ln(ff2 + h, params["ln2_g"][l], params["ln2_b"][l])

    cls = h.reshape(B, S, HIDDEN)[:, 0, :]
    z = jnp.tanh(jnp.dot(bf(cls), params["cls_w"],
                         preferred_element_type=F32) + params["cls_b"])
    return jnp.dot(bf(z), params["out_w"],
                   preferred_element_type=F32) + params["out_b"]


# ----------------------------- main -------------------------------------------
if __name__ == "__main__":
    key = jax.random.PRNGKey(0)
    kp, ki = jax.random.split(key)
    params = init_params(kp)

    input_ids = jax.random.randint(ki, (BATCH, SEQ), 2, VOCAB, dtype=jnp.int32)
    attention_mask = jnp.ones((BATCH, SEQ), dtype=jnp.int32)

    logits = roberta_forward(params, input_ids, attention_mask)
    logits = jax.block_until_ready(logits)

    ref = roberta_forward_ref(params, input_ids, attention_mask)
    assert logits.shape == (BATCH, NUM_LABELS)
    assert bool(jnp.all(jnp.isfinite(logits)))
    assert bool(jnp.allclose(logits, ref, rtol=2e-2, atol=5e-3)), (logits, ref)

    print("KERNEL_OK")
</pallas_src>

<mosaic_0001>
module attributes {stable_mosaic.version = 11 : i64} {
  func.func @_roberta_layer_kernel(%arg0: i32, %arg1: i32, %arg2: memref<1x16x128xf32, #tpu.memory_space<vmem>>, %arg3: memref<1x1x16xf32, #tpu.memory_space<vmem>>, %arg4: memref<1x128xf32, #tpu.memory_space<vmem>>, %arg5: memref<1x128xf32, #tpu.memory_space<vmem>>, %arg6: memref<1x128x384xbf16, #tpu.memory_space<vmem>>, %arg7: memref<1x1x384xf32, #tpu.memory_space<vmem>>, %arg8: memref<1x128x128xbf16, #tpu.memory_space<vmem>>, %arg9: memref<1x1x128xf32, #tpu.memory_space<vmem>>, %arg10: memref<1x1x128xf32, #tpu.memory_space<vmem>>, %arg11: memref<1x1x128xf32, #tpu.memory_space<vmem>>, %arg12: memref<1x128x256xbf16, #tpu.memory_space<vmem>>, %arg13: memref<1x1x256xf32, #tpu.memory_space<vmem>>, %arg14: memref<1x256x128xbf16, #tpu.memory_space<vmem>>, %arg15: memref<1x1x128xf32, #tpu.memory_space<vmem>>, %arg16: memref<1x1x128xf32, #tpu.memory_space<vmem>>, %arg17: memref<1x1x128xf32, #tpu.memory_space<vmem>>, %arg18: memref<128x128xbf16, #tpu.memory_space<vmem>>, %arg19: memref<1x128xf32, #tpu.memory_space<vmem>>, %arg20: memref<1x1x128xf32, #tpu.memory_space<vmem>>, %arg21: memref<16x128xf32, #tpu.memory_space<vmem>>) attributes {dimension_semantics = [#tpu.dimension_semantics<parallel>, #tpu.dimension_semantics<arbitrary>], iteration_bounds = array<i64: 2, 2>, scalar_prefetch = 0 : i64, scratch_operands = 1 : i64, tpu.core_type = #tpu.core_type<tc>, window_params = [{transform_indices = @transform_0, window_bounds = array<i64: 1, 16, 128>}, {transform_indices = @transform_1, window_bounds = array<i64: 1, 1, 16>}, {pipeline_mode = #tpu.pipeline_mode<synchronous>, transform_indices = @transform_2, window_bounds = array<i64: 1, 128>}, {pipeline_mode = #tpu.pipeline_mode<synchronous>, transform_indices = @transform_3, window_bounds = array<i64: 1, 128>}, {transform_indices = @transform_4, window_bounds = array<i64: 1, 128, 384>}, {transform_indices = @transform_5, window_bounds = array<i64: 1, 1, 384>}, {transform_indices = @transform_6, window_bounds = array<i64: 1, 128, 128>}, {transform_indices = @transform_7, window_bounds = array<i64: 1, 1, 128>}, {transform_indices = @transform_8, window_bounds = array<i64: 1, 1, 128>}, {transform_indices = @transform_9, window_bounds = array<i64: 1, 1, 128>}, {transform_indices = @transform_10, window_bounds = array<i64: 1, 128, 256>}, {transform_indices = @transform_11, window_bounds = array<i64: 1, 1, 256>}, {transform_indices = @transform_12, window_bounds = array<i64: 1, 256, 128>}, {transform_indices = @transform_13, window_bounds = array<i64: 1, 1, 128>}, {transform_indices = @transform_14, window_bounds = array<i64: 1, 1, 128>}, {transform_indices = @transform_15, window_bounds = array<i64: 1, 1, 128>}, {pipeline_mode = #tpu.pipeline_mode<synchronous>, transform_indices = @transform_16, window_bounds = array<i64: 128, 128>}, {pipeline_mode = #tpu.pipeline_mode<synchronous>, transform_indices = @transform_17, window_bounds = array<i64: 1, 128>}, {transform_indices = @transform_18, window_bounds = array<i64: 1, 1, 128>}]} {
    %c0_i32 = arith.constant 0 : i32
    %0 = arith.cmpi eq, %arg1, %c0_i32 : i32
    %1 = arith.extui %0 : i1 to i32
    %c0_i32_0 = arith.constant 0 : i32
    %2 = arith.cmpi ne, %1, %c0_i32_0 : i32
    scf.if %2 {
      %c0_80 = arith.constant 0 : index
      %c0_81 = arith.constant 0 : index
      %c0_82 = arith.constant 0 : index
      %202 = vector.load %arg2[%c0_80, %c0_81, %c0_82] : memref<1x16x128xf32, #tpu.memory_space<vmem>>, vector<1x16x128xf32>
      %203 = vector.shape_cast %202 : vector<1x16x128xf32> to vector<16x128xf32>
      %c0_83 = arith.constant 0 : index
      %c0_84 = arith.constant 0 : index
      %204 = vector.load %arg4[%c0_83, %c0_84] : memref<1x128xf32, #tpu.memory_space<vmem>>, vector<1x128xf32>
      %c0_85 = arith.constant 0 : index
      %c0_86 = arith.constant 0 : index
      %205 = vector.load %arg5[%c0_85, %c0_86] : memref<1x128xf32, #tpu.memory_space<vmem>>, vector<1x128xf32>
      %cst_87 = arith.constant dense<0.000000e+00> : vector<16xf32>
      %206 = vector.multi_reduction <add>, %203, %cst_87 [1] : vector<16x128xf32> to vector<16xf32>
      %207 = vector.shape_cast %206 : vector<16xf32> to vector<16x1xf32>
      %cst_88 = arith.constant 1.280000e+02 : f32
      %208 = vector.broadcast %cst_88 : f32 to vector<16x1xf32>
      %209 = arith.divf %207, %208 : vector<16x1xf32>
      %210 = vector.broadcast %209 : vector<16x1xf32> to vector<16x128xf32>
      %211 = arith.subf %203, %210 : vector<16x128xf32>
      %212 = vector.broadcast %209 : vector<16x1xf32> to vector<16x128xf32>
      %213 = arith.subf %203, %212 : vector<16x128xf32>
      %214 = arith.mulf %211, %213 : vector<16x128xf32>
      %cst_89 = arith.constant dense<0.000000e+00> : vector<16xf32>
      %215 = vector.multi_reduction <add>, %214, %cst_89 [1] : vector<16x128xf32> to vector<16xf32>
      %216 = vector.shape_cast %215 : vector<16xf32> to vector<16x1xf32>
      %cst_90 = arith.constant 1.280000e+02 : f32
      %217 = vector.broadcast %cst_90 : f32 to vector<16x1xf32>
      %218 = arith.divf %216, %217 : vector<16x1xf32>
      %219 = vector.broadcast %209 : vector<16x1xf32> to vector<16x128xf32>
      %220 = arith.subf %203, %219 : vector<16x128xf32>
      %cst_91 = arith.constant 9.99999974E-6 : f32
      %221 = vector.broadcast %cst_91 : f32 to vector<16x1xf32>
      %222 = arith.addf %218, %221 : vector<16x1xf32>
      %223 = math.rsqrt %222 : vector<16x1xf32>
      %224 = vector.broadcast %223 : vector<16x1xf32> to vector<16x128xf32>
      %225 = arith.mulf %220, %224 : vector<16x128xf32>
      %226 = vector.broadcast %204 : vector<1x128xf32> to vector<16x128xf32>
      %227 = arith.mulf %225, %226 : vector<16x128xf32>
      %228 = vector.broadcast %205 : vector<1x128xf32> to vector<16x128xf32>
      %229 = arith.addf %227, %228 : vector<16x128xf32>
      %c0_92 = arith.constant 0 : index
      %c0_93 = arith.constant 0 : index
      %230 = vector.load %arg21[%c0_92, %c0_93] : memref<16x128xf32, #tpu.memory_space<vmem>>, vector<16x128xf32>
      tpu.vector_store %arg21[%c0_92, %c0_93], %229 {strides = array<i32>} : memref<16x128xf32, #tpu.memory_space<vmem>>, vector<16x128xf32>,
    } else {
    }
    %c0 = arith.constant 0 : index
    %c0_1 = arith.constant 0 : index
    %3 = vector.load %arg21[%c0, %c0_1] : memref<16x128xf32, #tpu.memory_space<vmem>>, vector<16x128xf32>
    %c0_2 = arith.constant 0 : index
    %c0_3 = arith.constant 0 : index
    %c0_4 = arith.constant 0 : index
    %4 = vector.load %arg3[%c0_2, %c0_3, %c0_4] : memref<1x1x16xf32, #tpu.memory_space<vmem>>, vector<1x1x16xf32>
    %5 = vector.shape_cast %4 : vector<1x1x16xf32> to vector<1x16xf32>
    %6 = vector.shape_cast %5 : vector<1x16xf32> to vector<1x16xf32>
    %7 = vector.broadcast %6 : vector<1x16xf32> to vector<16x16xf32>
    %8 = arith.truncf %3 : vector<16x128xf32> to vector<16x128xbf16>
    %c0_5 = arith.constant 0 : index
    %c0_6 = arith.constant 0 : index
    %c0_7 = arith.constant 0 : index
    %9 = vector.load %arg6[%c0_5, %c0_6, %c0_7] : memref<1x128x384xbf16, #tpu.memory_space<vmem>>, vector<1x128x384xbf16>
    %10 = vector.shape_cast %9 : vector<1x128x384xbf16> to vector<128x384xbf16>
    %cst = arith.constant dense<0.000000e+00> : vector<16x384xf32>
    %11 = tpu.matmul %8, %10, %cst {dimension_numbers = #tpu.dot_dimension_numbers<[1], [0], [0], [1], [0, 0, 1, 1], [], []>} : vector<16x128xbf16>, vector<128x384xbf16>, vector<16x384xf32> -> vector<16x384xf32>
    %c0_8 = arith.constant 0 : index
    %c0_9 = arith.constant 0 : index
    %c0_10 = arith.constant 0 : index
    %12 = vector.load %arg7[%c0_8, %c0_9, %c0_10] : memref<1x1x384xf32, #tpu.memory_space<vmem>>, vector<1x1x384xf32>
    %13 = vector.shape_cast %12 : vector<1x1x384xf32> to vector<1x384xf32>
    %14 = vector.broadcast %13 : vector<1x384xf32> to vector<16x384xf32>
    %15 = arith.addf %11, %14 : vector<16x384xf32>
    %16 = vector.extract_strided_slice %15 {offsets = [0, 0], sizes = [16, 128], strides = [1, 1]} : vector<16x384xf32> to vector<16x128xf32>
    %17 = vector.extract_strided_slice %15 {offsets = [0, 128], sizes = [16, 128], strides = [1, 1]} : vector<16x384xf32> to vector<16x128xf32>
    %18 = vector.extract_strided_slice %15 {offsets = [0, 256], sizes = [16, 128], strides = [1, 1]} : vector<16x384xf32> to vector<16x128xf32>
    %19 = vector.extract_strided_slice %16 {offsets = [0, 0], sizes = [16, 32], strides = [1, 1]} : vector<16x128xf32> to vector<16x32xf32>
    %20 = arith.truncf %19 : vector<16x32xf32> to vector<16x32xbf16>
    %21 = vector.extract_strided_slice %17 {offsets = [0, 0], sizes = [16, 32], strides = [1, 1]} : vector<16x128xf32> to vector<16x32xf32>
    %22 = arith.truncf %21 : vector<16x32xf32> to vector<16x32xbf16>
    %23 = vector.extract_strided_slice %18 {offsets = [0, 0], sizes = [16, 32], strides = [1, 1]} : vector<16x128xf32> to vector<16x32xf32>
    %24 = arith.truncf %23 : vector<16x32xf32> to vector<16x32xbf16>
    %cst_11 = arith.constant dense<0.000000e+00> : vector<16x16xf32>
    %25 = tpu.matmul %20, %22, %cst_11 {dimension_numbers = #tpu.dot_dimension_numbers<[1], [1], [0], [0], [0, 0, 1, 0], [], []>} : vector<16x32xbf16>, vector<16x32xbf16>, vector<16x16xf32> -> vector<16x16xf32>
    %cst_12 = arith.constant 0.176776692 : f32
    %26 = vector.broadcast %cst_12 : f32 to vector<16x16xf32>
    %27 = arith.mulf %25, %26 : vector<16x16xf32>
    %28 = arith.addf %27, %7 : vector<16x16xf32>
    %cst_13 = arith.constant dense<0xFF800000> : vector<16xf32>
    %29 = vector.multi_reduction <maximumf>, %28, %cst_13 [1] : vector<16x16xf32> to vector<16xf32>
    %30 = vector.shape_cast %29 : vector<16xf32> to vector<16x1xf32>
    %31 = vector.broadcast %30 : vector<16x1xf32> to vector<16x16xf32>
    %32 = arith.subf %28, %31 : vector<16x16xf32>
    %33 = math.exp %32 : vector<16x16xf32>
    %cst_14 = arith.constant dense<0.000000e+00> : vector<16xf32>
    %34 = vector.multi_reduction <add>, %33, %cst_14 [1] : vector<16x16xf32> to vector<16xf32>
    %35 = vector.shape_cast %34 : vector<16xf32> to vector<16x1xf32>
    %36 = tpu.reciprocal %35 {approx = true} : vector<16x1xf32> -> vector<16x1xf32>
    %37 = vector.broadcast %36 : vector<16x1xf32> to vector<16x16xf32>
    %38 = arith.mulf %33, %37 : vector<16x16xf32>
    %39 = arith.truncf %38 : vector<16x16xf32> to vector<16x16xbf16>
    %cst_15 = arith.constant dense<0.000000e+00> : vector<16x32xf32>
    %40 = tpu.matmul %39, %24, %cst_15 {dimension_numbers = #tpu.dot_dimension_numbers<[1], [0], [0], [1], [0, 0, 1, 1], [], []>} : vector<16x16xbf16>, vector<16x32xbf16>, vector<16x32xf32> -> vector<16x32xf32>
    %41 = vector.extract_strided_slice %16 {offsets = [0, 32], sizes = [16, 32], strides = [1, 1]} : vector<16x128xf32> to vector<16x32xf32>
    %42 = arith.truncf %41 : vector<16x32xf32> to vector<16x32xbf16>
    %43 = vector.extract_strided_slice %17 {offsets = [0, 32], sizes = [16, 32], strides = [1, 1]} : vector<16x128xf32> to vector<16x32xf32>
    %44 = arith.truncf %43 : vector<16x32xf32> to vector<16x32xbf16>
    %45 = vector.extract_strided_slice %18 {offsets = [0, 32], sizes = [16, 32], strides = [1, 1]} : vector<16x128xf32> to vector<16x32xf32>
    %46 = arith.truncf %45 : vector<16x32xf32> to vector<16x32xbf16>
    %cst_16 = arith.constant dense<0.000000e+00> : vector<16x16xf32>
    %47 = tpu.matmul %42, %44, %cst_16 {dimension_numbers = #tpu.dot_dimension_numbers<[1], [1], [0], [0], [0, 0, 1, 0], [], []>} : vector<16x32xbf16>, vector<16x32xbf16>, vector<16x16xf32> -> vector<16x16xf32>
    %cst_17 = arith.constant 0.176776692 : f32
    %48 = vector.broadcast %cst_17 : f32 to vector<16x16xf32>
    %49 = arith.mulf %47, %48 : vector<16x16xf32>
    %50 = arith.addf %49, %7 : vector<16x16xf32>
    %cst_18 = arith.constant dense<0xFF800000> : vector<16xf32>
    %51 = vector.multi_reduction <maximumf>, %50, %cst_18 [1] : vector<16x16xf32> to vector<16xf32>
    %52 = vector.shape_cast %51 : vector<16xf32> to vector<16x1xf32>
    %53 = vector.broadcast %52 : vector<16x1xf32> to vector<16x16xf32>
    %54 = arith.subf %50, %53 : vector<16x16xf32>
    %55 = math.exp %54 : vector<16x16xf32>
    %cst_19 = arith.constant dense<0.000000e+00> : vector<16xf32>
    %56 = vector.multi_reduction <add>, %55, %cst_19 [1] : vector<16x16xf32> to vector<16xf32>
    %57 = vector.shape_cast %56 : vector<16xf32> to vector<16x1xf32>
    %58 = tpu.reciprocal %57 {approx = true} : vector<16x1xf32> -> vector<16x1xf32>
    %59 = vector.broadcast %58 : vector<16x1xf32> to vector<16x16xf32>
    %60 = arith.mulf %55, %59 : vector<16x16xf32>
    %61 = arith.truncf %60 : vector<16x16xf32> to vector<16x16xbf16>
    %cst_20 = arith.constant dense<0.000000e+00> : vector<16x32xf32>
    %62 = tpu.matmul %61, %46, %cst_20 {dimension_numbers = #tpu.dot_dimension_numbers<[1], [0], [0], [1], [0, 0, 1, 1], [], []>} : vector<16x16xbf16>, vector<16x32xbf16>, vector<16x32xf32> -> vector<16x32xf32>
    %63 = vector.extract_strided_slice %16 {offsets = [0, 64], sizes = [16, 32], strides = [1, 1]} : vector<16x128xf32> to vector<16x32xf32>
    %64 = arith.truncf %63 : vector<16x32xf32> to vector<16x32xbf16>
    %65 = vector.extract_strided_slice %17 {offsets = [0, 64], sizes = [16, 32], strides = [1, 1]} : vector<16x128xf32> to vector<16x32xf32>
    %66 = arith.truncf %65 : vector<16x32xf32> to vector<16x32xbf16>
    %67 = vector.extract_strided_slice %18 {offsets = [0, 64], sizes = [16, 32], strides = [1, 1]} : vector<16x128xf32> to vector<16x32xf32>
    %68 = arith.truncf %67 : vector<16x32xf32> to vector<16x32xbf16>
    %cst_21 = arith.constant dense<0.000000e+00> : vector<16x16xf32>
    %69 = tpu.matmul %64, %66, %cst_21 {dimension_numbers = #tpu.dot_dimension_numbers<[1], [1], [0], [0], [0, 0, 1, 0], [], []>} : vector<16x32xbf16>, vector<16x32xbf16>, vector<16x16xf32> -> vector<16x16xf32>
    %cst_22 = arith.constant 0.176776692 : f32
    %70 = vector.broadcast %cst_22 : f32 to vector<16x16xf32>
    %71 = arith.mulf %69, %70 : vector<16x16xf32>
    %72 = arith.addf %71, %7 : vector<16x16xf32>
    %cst_23 = arith.constant dense<0xFF800000> : vector<16xf32>
    %73 = vector.multi_reduction <maximumf>, %72, %cst_23 [1] : vector<16x16xf32> to vector<16xf32>
    %74 = vector.shape_cast %73 : vector<16xf32> to vector<16x1xf32>
    %75 = vector.broadcast %74 : vector<16x1xf32> to vector<16x16xf32>
    %76 = arith.subf %72, %75 : vector<16x16xf32>
    %77 = math.exp %76 : vector<16x16xf32>
    %cst_24 = arith.constant dense<0.000000e+00> : vector<16xf32>
    %78 = vector.multi_reduction <add>, %77, %cst_24 [1] : vector<16x16xf32> to vector<16xf32>
    %79 = vector.shape_cast %78 : vector<16xf32> to vector<16x1xf32>
    %80 = tpu.reciprocal %79 {approx = true} : vector<16x1xf32> -> vector<16x1xf32>
    %81 = vector.broadcast %80 : vector<16x1xf32> to vector<16x16xf32>
    %82 = arith.mulf %77, %81 : vector<16x16xf32>
    %83 = arith.truncf %82 : vector<16x16xf32> to vector<16x16xbf16>
    %cst_25 = arith.constant dense<0.000000e+00> : vector<16x32xf32>
    %84 = tpu.matmul %83, %68, %cst_25 {dimension_numbers = #tpu.dot_dimension_numbers<[1], [0], [0], [1], [0, 0, 1, 1], [], []>} : vector<16x16xbf16>, vector<16x32xbf16>, vector<16x32xf32> -> vector<16x32xf32>
    %85 = vector.extract_strided_slice %16 {offsets = [0, 96], sizes = [16, 32], strides = [1, 1]} : vector<16x128xf32> to vector<16x32xf32>
    %86 = arith.truncf %85 : vector<16x32xf32> to vector<16x32xbf16>
    %87 = vector.extract_strided_slice %17 {offsets = [0, 96], sizes = [16, 32], strides = [1, 1]} : vector<16x128xf32> to vector<16x32xf32>
    %88 = arith.truncf %87 : vector<16x32xf32> to vector<16x32xbf16>
    %89 = vector.extract_strided_slice %18 {offsets = [0, 96], sizes = [16, 32], strides = [1, 1]} : vector<16x128xf32> to vector<16x32xf32>
    %90 = arith.truncf %89 : vector<16x32xf32> to vector<16x32xbf16>
    %cst_26 = arith.constant dense<0.000000e+00> : vector<16x16xf32>
    %91 = tpu.matmul %86, %88, %cst_26 {dimension_numbers = #tpu.dot_dimension_numbers<[1], [1], [0], [0], [0, 0, 1, 0], [], []>} : vector<16x32xbf16>, vector<16x32xbf16>, vector<16x16xf32> -> vector<16x16xf32>
    %cst_27 = arith.constant 0.176776692 : f32
    %92 = vector.broadcast %cst_27 : f32 to vector<16x16xf32>
    %93 = arith.mulf %91, %92 : vector<16x16xf32>
    %94 = arith.addf %93, %7 : vector<16x16xf32>
    %cst_28 = arith.constant dense<0xFF800000> : vector<16xf32>
    %95 = vector.multi_reduction <maximumf>, %94, %cst_28 [1] : vector<16x16xf32> to vector<16xf32>
    %96 = vector.shape_cast %95 : vector<16xf32> to vector<16x1xf32>
    %97 = vector.broadcast %96 : vector<16x1xf32> to vector<16x16xf32>
    %98 = arith.subf %94, %97 : vector<16x16xf32>
    %99 = math.exp %98 : vector<16x16xf32>
    %cst_29 = arith.constant dense<0.000000e+00> : vector<16xf32>
    %100 = vector.multi_reduction <add>, %99, %cst_29 [1] : vector<16x16xf32> to vector<16xf32>
    %101 = vector.shape_cast %100 : vector<16xf32> to vector<16x1xf32>
    %102 = tpu.reciprocal %101 {approx = true} : vector<16x1xf32> -> vector<16x1xf32>
    %103 = vector.broadcast %102 : vector<16x1xf32> to vector<16x16xf32>
    %104 = arith.mulf %99, %103 : vector<16x16xf32>
    %105 = arith.truncf %104 : vector<16x16xf32> to vector<16x16xbf16>
    %cst_30 = arith.constant dense<0.000000e+00> : vector<16x32xf32>
    %106 = tpu.matmul %105, %90, %cst_30 {dimension_numbers = #tpu.dot_dimension_numbers<[1], [0], [0], [1], [0, 0, 1, 1], [], []>} : vector<16x16xbf16>, vector<16x32xbf16>, vector<16x32xf32> -> vector<16x32xf32>
    %107 = tpu.concatenate %40, %62, %84, %106 in 1 : vector<16x32xf32>, vector<16x32xf32>, vector<16x32xf32>, vector<16x32xf32> -> vector<16x128xf32>
    %108 = arith.truncf %107 : vector<16x128xf32> to vector<16x128xbf16>
    %c0_31 = arith.constant 0 : index
    %c0_32 = arith.constant 0 : index
    %c0_33 = arith.constant 0 : index
    %109 = vector.load %arg8[%c0_31, %c0_32, %c0_33] : memref<1x128x128xbf16, #tpu.memory_space<vmem>>, vector<1x128x128xbf16>
    %110 = vector.shape_cast %109 : vector<1x128x128xbf16> to vector<128x128xbf16>
    %cst_34 = arith.constant dense<0.000000e+00> : vector<16x128xf32>
    %111 = tpu.matmul %108, %110, %cst_34 {dimension_numbers = #tpu.dot_dimension_numbers<[1], [0], [0], [1], [0, 0, 1, 1], [], []>} : vector<16x128xbf16>, vector<128x128xbf16>, vector<16x128xf32> -> vector<16x128xf32>
    %c0_35 = arith.constant 0 : index
    %c0_36 = arith.constant 0 : index
    %c0_37 = arith.constant 0 : index
    %112 = vector.load %arg9[%c0_35, %c0_36, %c0_37] : memref<1x1x128xf32, #tpu.memory_space<vmem>>, vector<1x1x128xf32>
    %113 = vector.shape_cast %112 : vector<1x1x128xf32> to vector<1x128xf32>
    %114 = vector.broadcast %113 : vector<1x128xf32> to vector<16x128xf32>
    %115 = arith.addf %111, %114 : vector<16x128xf32>
    %116 = arith.addf %115, %3 : vector<16x128xf32>
    %c0_38 = arith.constant 0 : index
    %c0_39 = arith.constant 0 : index
    %c0_40 = arith.constant 0 : index
    %117 = vector.load %arg10[%c0_38, %c0_39, %c0_40] : memref<1x1x128xf32, #tpu.memory_space<vmem>>, vector<1x1x128xf32>
    %118 = vector.shape_cast %117 : vector<1x1x128xf32> to vector<1x128xf32>
    %c0_41 = arith.constant 0 : index
    %c0_42 = arith.constant 0 : index
    %c0_43 = arith.constant 0 : index
    %119 = vector.load %arg11[%c0_41, %c0_42, %c0_43] : memref<1x1x128xf32, #tpu.memory_space<vmem>>, vector<1x1x128xf32>
    %120 = vector.shape_cast %119 : vector<1x1x128xf32> to vector<1x128xf32>
    %cst_44 = arith.constant dense<0.000000e+00> : vector<16xf32>
    %121 = vector.multi_reduction <add>, %116, %cst_44 [1] : vector<16x128xf32> to vector<16xf32>
    %122 = vector.shape_cast %121 : vector<16xf32> to vector<16x1xf32>
    %cst_45 = arith.constant 1.280000e+02 : f32
    %123 = vector.broadcast %cst_45 : f32 to vector<16x1xf32>
    %124 = arith.divf %122, %123 : vector<16x1xf32>
    %125 = vector.broadcast %124 : vector<16x1xf32> to vector<16x128xf32>
    %126 = arith.subf %116, %125 : vector<16x128xf32>
    %127 = vector.broadcast %124 : vector<16x1xf32> to vector<16x128xf32>
    %128 = arith.subf %116, %127 : vector<16x128xf32>
    %129 = arith.mulf %126, %128 : vector<16x128xf32>
    %cst_46 = arith.constant dense<0.000000e+00> : vector<16xf32>
    %130 = vector.multi_reduction <add>, %129, %cst_46 [1] : vector<16x128xf32> to vector<16xf32>
    %131 = vector.shape_cast %130 : vector<16xf32> to vector<16x1xf32>
    %cst_47 = arith.constant 1.280000e+02 : f32
    %132 = vector.broadcast %cst_47 : f32 to vector<16x1xf32>
    %133 = arith.divf %131, %132 : vector<16x1xf32>
    %134 = vector.broadcast %124 : vector<16x1xf32> to vector<16x128xf32>
    %135 = arith.subf %116, %134 : vector<16x128xf32>
    %cst_48 = arith.constant 9.99999974E-6 : f32
    %136 = vector.broadcast %cst_48 : f32 to vector<16x1xf32>
    %137 = arith.addf %133, %136 : vector<16x1xf32>
    %138 = math.rsqrt %137 : vector<16x1xf32>
    %139 = vector.broadcast %138 : vector<16x1xf32> to vector<16x128xf32>
    %140 = arith.mulf %135, %139 : vector<16x128xf32>
    %141 = vector.broadcast %118 : vector<1x128xf32> to vector<16x128xf32>
    %142 = arith.mulf %140, %141 : vector<16x128xf32>
    %143 = vector.broadcast %120 : vector<1x128xf32> to vector<16x128xf32>
    %144 = arith.addf %142, %143 : vector<16x128xf32>
    %145 = arith.truncf %144 : vector<16x128xf32> to vector<16x128xbf16>
    %c0_49 = arith.constant 0 : index
    %c0_50 = arith.constant 0 : index
    %c0_51 = arith.constant 0 : index
    %146 = vector.load %arg12[%c0_49, %c0_50, %c0_51] : memref<1x128x256xbf16, #tpu.memory_space<vmem>>, vector<1x128x256xbf16>
    %147 = vector.shape_cast %146 : vector<1x128x256xbf16> to vector<128x256xbf16>
    %cst_52 = arith.constant dense<0.000000e+00> : vector<16x256xf32>
    %148 = tpu.matmul %145, %147, %cst_52 {dimension_numbers = #tpu.dot_dimension_numbers<[1], [0], [0], [1], [0, 0, 1, 1], [], []>} : vector<16x128xbf16>, vector<128x256xbf16>, vector<16x256xf32> -> vector<16x256xf32>
    %c0_53 = arith.constant 0 : index
    %c0_54 = arith.constant 0 : index
    %c0_55 = arith.constant 0 : index
    %149 = vector.load %arg13[%c0_53, %c0_54, %c0_55] : memref<1x1x256xf32, #tpu.memory_space<vmem>>, vector<1x1x256xf32>
    %150 = vector.shape_cast %149 : vector<1x1x256xf32> to vector<1x256xf32>
    %151 = vector.broadcast %150 : vector<1x256xf32> to vector<16x256xf32>
    %152 = arith.addf %148, %151 : vector<16x256xf32>
    %cst_56 = arith.constant 5.000000e-01 : f32
    %153 = vector.broadcast %cst_56 : f32 to vector<16x256xf32>
    %154 = arith.mulf %153, %152 : vector<16x256xf32>
    %cst_57 = arith.constant 0.707106769 : f32
    %155 = vector.broadcast %cst_57 : f32 to vector<16x256xf32>
    %156 = arith.mulf %152, %155 : vector<16x256xf32>
    %157 = math.erf %156 : vector<16x256xf32>
    %cst_58 = arith.constant 1.000000e+00 : f32
    %158 = vector.broadcast %cst_58 : f32 to vector<16x256xf32>
    %159 = arith.addf %158, %157 : vector<16x256xf32>
    %160 = arith.mulf %154, %159 : vector<16x256xf32>
    %161 = arith.truncf %160 : vector<16x256xf32> to vector<16x256xbf16>
    %c0_59 = arith.constant 0 : index
    %c0_60 = arith.constant 0 : index
    %c0_61 = arith.constant 0 : index
    %162 = vector.load %arg14[%c0_59, %c0_60, %c0_61] : memref<1x256x128xbf16, #tpu.memory_space<vmem>>, vector<1x256x128xbf16>
    %163 = vector.shape_cast %162 : vector<1x256x128xbf16> to vector<256x128xbf16>
    %cst_62 = arith.constant dense<0.000000e+00> : vector<16x128xf32>
    %164 = tpu.matmul %161, %163, %cst_62 {dimension_numbers = #tpu.dot_dimension_numbers<[1], [0], [0], [1], [0, 0, 1, 1], [], []>} : vector<16x256xbf16>, vector<256x128xbf16>, vector<16x128xf32> -> vector<16x128xf32>
    %c0_63 = arith.constant 0 : index
    %c0_64 = arith.constant 0 : index
    %c0_65 = arith.constant 0 : index
    %165 = vector.load %arg15[%c0_63, %c0_64, %c0_65] : memref<1x1x128xf32, #tpu.memory_space<vmem>>, vector<1x1x128xf32>
    %166 = vector.shape_cast %165 : vector<1x1x128xf32> to vector<1x128xf32>
    %167 = vector.broadcast %166 : vector<1x128xf32> to vector<16x128xf32>
    %168 = arith.addf %164, %167 : vector<16x128xf32>
    %169 = arith.addf %168, %144 : vector<16x128xf32>
    %c0_66 = arith.constant 0 : index
    %c0_67 = arith.constant 0 : index
    %c0_68 = arith.constant 0 : index
    %170 = vector.load %arg16[%c0_66, %c0_67, %c0_68] : memref<1x1x128xf32, #tpu.memory_space<vmem>>, vector<1x1x128xf32>
    %171 = vector.shape_cast %170 : vector<1x1x128xf32> to vector<1x128xf32>
    %c0_69 = arith.constant 0 : index
    %c0_70 = arith.constant 0 : index
    %c0_71 = arith.constant 0 : index
    %172 = vector.load %arg17[%c0_69, %c0_70, %c0_71] : memref<1x1x128xf32, #tpu.memory_space<vmem>>, vector<1x1x128xf32>
    %173 = vector.shape_cast %172 : vector<1x1x128xf32> to vector<1x128xf32>
    %cst_72 = arith.constant dense<0.000000e+00> : vector<16xf32>
    %174 = vector.multi_reduction <add>, %169, %cst_72 [1] : vector<16x128xf32> to vector<16xf32>
    %175 = vector.shape_cast %174 : vector<16xf32> to vector<16x1xf32>
    %cst_73 = arith.constant 1.280000e+02 : f32
    %176 = vector.broadcast %cst_73 : f32 to vector<16x1xf32>
    %177 = arith.divf %175, %176 : vector<16x1xf32>
    %178 = vector.broadcast %177 : vector<16x1xf32> to vector<16x128xf32>
    %179 = arith.subf %169, %178 : vector<16x128xf32>
    %180 = vector.broadcast %177 : vector<16x1xf32> to vector<16x128xf32>
    %181 = arith.subf %169, %180 : vector<16x128xf32>
    %182 = arith.mulf %179, %181 : vector<16x128xf32>
    %cst_74 = arith.constant dense<0.000000e+00> : vector<16xf32>
    %183 = vector.multi_reduction <add>, %182, %cst_74 [1] : vector<16x128xf32> to vector<16xf32>
    %184 = vector.shape_cast %183 : vector<16xf32> to vector<16x1xf32>
    %cst_75 = arith.constant 1.280000e+02 : f32
    %185 = vector.broadcast %cst_75 : f32 to vector<16x1xf32>
    %186 = arith.divf %184, %185 : vector<16x1xf32>
    %187 = vector.broadcast %177 : vector<16x1xf32> to vector<16x128xf32>
    %188 = arith.subf %169, %187 : vector<16x128xf32>
    %cst_76 = arith.constant 9.99999974E-6 : f32
    %189 = vector.broadcast %cst_76 : f32 to vector<16x1xf32>
    %190 = arith.addf %186, %189 : vector<16x1xf32>
    %191 = math.rsqrt %190 : vector<16x1xf32>
    %192 = vector.broadcast %191 : vector<16x1xf32> to vector<16x128xf32>
    %193 = arith.mulf %188, %192 : vector<16x128xf32>
    %194 = vector.broadcast %171 : vector<1x128xf32> to vector<16x128xf32>
    %195 = arith.mulf %193, %194 : vector<16x128xf32>
    %196 = vector.broadcast %173 : vector<1x128xf32> to vector<16x128xf32>
    %197 = arith.addf %195, %196 : vector<16x128xf32>
    %c0_77 = arith.constant 0 : index
    %c0_78 = arith.constant 0 : index
    %198 = vector.load %arg21[%c0_77, %c0_78] : memref<16x128xf32, #tpu.memory_space<vmem>>, vector<16x128xf32>
    tpu.vector_store %arg21[%c0_77, %c0_78], %197 {strides = array<i32>} : memref<16x128xf32, #tpu.memory_space<vmem>>, vector<16x128xf32>,
    %c1_i32 = arith.constant 1 : i32
    %199 = arith.cmpi eq, %arg1, %c1_i32 : i32
    %200 = arith.extui %199 : i1 to i32
    %c0_i32_79 = arith.constant 0 : i32
    %201 = arith.cmpi ne, %200, %c0_i32_79 : i32
    scf.if %201 {
      %202 = vector.extract_strided_slice %197 {offsets = [0, 0], sizes = [8, 128], strides = [1, 1]} : vector<16x128xf32> to vector<8x128xf32>
      %203 = arith.truncf %202 : vector<8x128xf32> to vector<8x128xbf16>
      %c0_80 = arith.constant 0 : index
      %c0_81 = arith.constant 0 : index
      %204 = vector.load %arg18[%c0_80, %c0_81] : memref<128x128xbf16, #tpu.memory_space<vmem>>, vector<128x128xbf16>
      %cst_82 = arith.constant dense<0.000000e+00> : vector<8x128xf32>
      %205 = tpu.matmul %203, %204, %cst_82 {dimension_numbers = #tpu.dot_dimension_numbers<[1], [0], [0], [1], [0, 0, 1, 1], [], []>} : vector<8x128xbf16>, vector<128x128xbf16>, vector<8x128xf32> -> vector<8x128xf32>
      %c0_83 = arith.constant 0 : index
      %c0_84 = arith.constant 0 : index
      %206 = vector.load %arg19[%c0_83, %c0_84] : memref<1x128xf32, #tpu.memory_space<vmem>>, vector<1x128xf32>
      %207 = vector.broadcast %206 : vector<1x128xf32> to vector<8x128xf32>
      %208 = arith.addf %205, %207 : vector<8x128xf32>
      %209 = math.tanh %208 : vector<8x128xf32>
      %210 = vector.extract_strided_slice %209 {offsets = [0, 0], sizes = [1, 128], strides = [1, 1]} : vector<8x128xf32> to vector<1x128xf32>
      %c0_85 = arith.constant 0 : index
      %c0_86 = arith.constant 0 : index
      %c0_87 = arith.constant 0 : index
      %211 = vector.load %arg20[%c0_85, %c0_86, %c0_87] : memref<1x1x128xf32, #tpu.memory_space<vmem>>, vector<1x1x128xf32>
      %212 = vector.shape_cast %211 : vector<1x1x128xf32> to vector<1x128xf32>
      %213 = vector.shape_cast %210 : vector<1x128xf32> to vector<1x1x128xf32>
      tpu.vector_store %arg20[%c0_85, %c0_86, %c0_87], %213 {strides = array<i32>} : memref<1x1x128xf32, #tpu.memory_space<vmem>>, vector<1x1x128xf32>,
    } else {
    }
    return
  }
  func.func @transform_0(%arg0: i32, %arg1: i32) -> (i32, i32, i32) {
    %c0_i32 = arith.constant 0 : i32
    %c0_i32_0 = arith.constant 0 : i32
    %c0_i32_1 = arith.constant 0 : i32
    return %arg0, %c0_i32, %c0_i32_0 : i32, i32, i32
  }
  func.func @transform_1(%arg0: i32, %arg1: i32) -> (i32, i32, i32) {
    %c0_i32 = arith.constant 0 : i32
    %c0_i32_0 = arith.constant 0 : i32
    %c0_i32_1 = arith.constant 0 : i32
    return %arg0, %c0_i32, %c0_i32_0 : i32, i32, i32
  }
  func.func @transform_2(%arg0: i32, %arg1: i32) -> (i32, i32) {
    %c0_i32 = arith.constant 0 : i32
    %c0_i32_0 = arith.constant 0 : i32
    %c0_i32_1 = arith.constant 0 : i32
    return %c0_i32, %c0_i32_0 : i32, i32
  }
  func.func @transform_3(%arg0: i32, %arg1: i32) -> (i32, i32) {
    %c0_i32 = arith.constant 0 : i32
    %c0_i32_0 = arith.constant 0 : i32
    %c0_i32_1 = arith.constant 0 : i32
    return %c0_i32, %c0_i32_0 : i32, i32
  }
  func.func @transform_4(%arg0: i32, %arg1: i32) -> (i32, i32, i32) {
    %c0_i32 = arith.constant 0 : i32
    %c0_i32_0 = arith.constant 0 : i32
    %c0_i32_1 = arith.constant 0 : i32
    return %arg1, %c0_i32, %c0_i32_0 : i32, i32, i32
  }
  func.func @transform_5(%arg0: i32, %arg1: i32) -> (i32, i32, i32) {
    %c0_i32 = arith.constant 0 : i32
    %c0_i32_0 = arith.constant 0 : i32
    %c0_i32_1 = arith.constant 0 : i32
    return %arg1, %c0_i32, %c0_i32_0 : i32, i32, i32
  }
  func.func @transform_6(%arg0: i32, %arg1: i32) -> (i32, i32, i32) {
    %c0_i32 = arith.constant 0 : i32
    %c0_i32_0 = arith.constant 0 : i32
    %c0_i32_1 = arith.constant 0 : i32
    return %arg1, %c0_i32, %c0_i32_0 : i32, i32, i32
  }
  func.func @transform_7(%arg0: i32, %arg1: i32) -> (i32, i32, i32) {
    %c0_i32 = arith.constant 0 : i32
    %c0_i32_0 = arith.constant 0 : i32
    %c0_i32_1 = arith.constant 0 : i32
    return %arg1, %c0_i32, %c0_i32_0 : i32, i32, i32
  }
  func.func @transform_8(%arg0: i32, %arg1: i32) -> (i32, i32, i32) {
    %c0_i32 = arith.constant 0 : i32
    %c0_i32_0 = arith.constant 0 : i32
    %c0_i32_1 = arith.constant 0 : i32
    return %arg1, %c0_i32, %c0_i32_0 : i32, i32, i32
  }
  func.func @transform_9(%arg0: i32, %arg1: i32) -> (i32, i32, i32) {
    %c0_i32 = arith.constant 0 : i32
    %c0_i32_0 = arith.constant 0 : i32
    %c0_i32_1 = arith.constant 0 : i32
    return %arg1, %c0_i32, %c0_i32_0 : i32, i32, i32
  }
  func.func @transform_10(%arg0: i32, %arg1: i32) -> (i32, i32, i32) {
    %c0_i32 = arith.constant 0 : i32
    %c0_i32_0 = arith.constant 0 : i32
    %c0_i32_1 = arith.constant 0 : i32
    return %arg1, %c0_i32, %c0_i32_0 : i32, i32, i32
  }
  func.func @transform_11(%arg0: i32, %arg1: i32) -> (i32, i32, i32) {
    %c0_i32 = arith.constant 0 : i32
    %c0_i32_0 = arith.constant 0 : i32
    %c0_i32_1 = arith.constant 0 : i32
    return %arg1, %c0_i32, %c0_i32_0 : i32, i32, i32
  }
  func.func @transform_12(%arg0: i32, %arg1: i32) -> (i32, i32, i32) {
    %c0_i32 = arith.constant 0 : i32
    %c0_i32_0 = arith.constant 0 : i32
    %c0_i32_1 = arith.constant 0 : i32
    return %arg1, %c0_i32, %c0_i32_0 : i32, i32, i32
  }
  func.func @transform_13(%arg0: i32, %arg1: i32) -> (i32, i32, i32) {
    %c0_i32 = arith.constant 0 : i32
    %c0_i32_0 = arith.constant 0 : i32
    %c0_i32_1 = arith.constant 0 : i32
    return %arg1, %c0_i32, %c0_i32_0 : i32, i32, i32
  }
  func.func @transform_14(%arg0: i32, %arg1: i32) -> (i32, i32, i32) {
    %c0_i32 = arith.constant 0 : i32
    %c0_i32_0 = arith.constant 0 : i32
    %c0_i32_1 = arith.constant 0 : i32
    return %arg1, %c0_i32, %c0_i32_0 : i32, i32, i32
  }
  func.func @transform_15(%arg0: i32, %arg1: i32) -> (i32, i32, i32) {
    %c0_i32 = arith.constant 0 : i32
    %c0_i32_0 = arith.constant 0 : i32
    %c0_i32_1 = arith.constant 0 : i32
    return %arg1, %c0_i32, %c0_i32_0 : i32, i32, i32
  }
  func.func @transform_16(%arg0: i32, %arg1: i32) -> (i32, i32) {
    %c0_i32 = arith.constant 0 : i32
    %c0_i32_0 = arith.constant 0 : i32
    %c0_i32_1 = arith.constant 0 : i32
    return %c0_i32, %c0_i32_0 : i32, i32
  }
  func.func @transform_17(%arg0: i32, %arg1: i32) -> (i32, i32) {
    %c0_i32 = arith.constant 0 : i32
    %c0_i32_0 = arith.constant 0 : i32
    %c0_i32_1 = arith.constant 0 : i32
    return %c0_i32, %c0_i32_0 : i32, i32
  }
  func.func @transform_18(%arg0: i32, %arg1: i32) -> (i32, i32, i32) {
    %c0_i32 = arith.constant 0 : i32
    %c0_i32_0 = arith.constant 0 : i32
    %c0_i32_1 = arith.constant 0 : i32
    return %arg0, %c0_i32, %c0_i32_0 : i32, i32, i32
  }
}

</mosaic_0001>

<bundles_post_ra>
// kernel: roberta_forward.1
= control target key start
LH: loop header
LB: loop body
LE: loop exit
PB: predicated region body
PF: predicated region fallthrough
CT: control target
= control target key end

     0   :  { %s3841_s0 = inlined_call_operand.vmem [shape: f32[2,16,128], index: 0, kind: input, shape index: {}]   ;;  %s3842_s1 = inlined_call_operand.vmem [shape: f32[2,1,16], index: 1, kind: input, shape index: {}]   ;;  %s3843_s2 = inlined_call_operand.vmem [shape: f32[1,128], index: 2, kind: input, shape index: {}]   ;;  %s3844_s3 = inlined_call_operand.vmem [shape: f32[1,128], index: 3, kind: input, shape index: {}]   ;;  %s3845_s4 = inlined_call_operand.vmem [shape: bf16[2,128,384], index: 4, kind: input, shape index: {}]   ;;  %s3846_s5 = inlined_call_operand.vmem [shape: f32[2,1,384], index: 5, kind: input, shape index: {}]   ;;  %s3847_s6 = inlined_call_operand.hbm [shape: bf16[2,128,128], index: 6, kind: input, shape index: {}]   ;;  %s3848_s7 = inlined_call_operand.vmem [shape: f32[2,1,128], index: 7, kind: input, shape index: {}]   ;;  %s3849_s8 = inlined_call_operand.vmem [shape: f32[2,1,128], index: 8, kind: input, shape index: {}]   ;;  %s3850_s9 = inlined_call_operand.vmem [shape: f32[2,1,128], index: 9, kind: input, shape index: {}]   ;;  %s3851_s10 = inlined_call_operand.vmem [shape: bf16[2,128,256], index: 10, kind: input, shape index: {}]   ;;  %s3852_s11 = inlined_call_operand.vmem [shape: f32[2,1,256], index: 11, kind: input, shape index: {}]   ;;  %s3853_s12 = inlined_call_operand.hbm [shape: bf16[2,256,128], index: 12, kind: input, shape index: {}]   ;;  %s3854_s13 = inlined_call_operand.vmem [shape: f32[2,1,128], index: 13, kind: input, shape index: {}]   ;;  %s3855_s14 = inlined_call_operand.vmem [shape: f32[2,1,128], index: 14, kind: input, shape index: {}]   ;;  %s3856_s15 = inlined_call_operand.vmem [shape: f32[2,1,128], index: 15, kind: input, shape index: {}]   ;;  %s3857_s16 = inlined_call_operand.vmem [shape: bf16[128,128], index: 16, kind: input, shape index: {}]   ;;  %s3858_s17 = inlined_call_operand.vmem [shape: f32[1,128], index: 17, kind: input, shape index: {}]   ;;  %s3859_s18 = inlined_call_operand.vmem [shape: f32[2,1,128], index: 18, kind: output, shape index: {}]  }
   0x1   :  { %3867 = sst [smem:[#allocation17_spill]] %s3841_s0 }
   0x2   :  { %3868 = sst [smem:[#allocation18_spill]] %s3842_s1 }
   0x3   :  { %3869 = sst [smem:[#allocation19_spill]] %s3843_s2 }
   0x4   :  { %3870 = sst [smem:[#allocation20_spill]] %s3844_s3 }
   0x5   :  { %3871 = sst [smem:[#allocation21_spill]] %s3845_s4 }
   0x6   :  { %3872 = sst [smem:[#allocation22_spill]] %s3846_s5 }
   0x7   :  { %3873 = sst [smem:[#allocation23_spill]] %s3847_s6 }
   0x8   :  { %3874 = sst [smem:[#allocation24_spill]] %s3849_s8 }
   0x9   :  { %3875 = sst [smem:[#allocation25_spill]] %s3850_s9 }
   0xa   :  { %3876 = sst [smem:[#allocation26_spill]] %s3851_s10 }
   0xb   :  { %3877 = sst [smem:[#allocation27_spill]] %s3853_s12 }
   0xc   :  { %3878 = sst [smem:[#allocation28_spill]] %s3854_s13 }
   0xd   :  { %3879 = sst [smem:[#allocation29_spill]] %s3855_s14 }
   0xe   :  { %3880 = sst [smem:[#allocation30_spill]] %s3856_s15 }
   0xf   :  { %3881 = sst [smem:[#allocation31_spill]] %s3857_s16 }
  0x10   :  { %3882 = sst [smem:[#allocation32_spill]] %s3858_s17 }
  0x11   :  { %3883 = sst [smem:[#allocation33_spill]] %s3859_s18 }
  0x12   :  { %23 = vsyncpa [#allocation4], 0 }
  0x13   :  { %25 = vsyncpa [#allocation4 + $0x1], 0 }
  0x14   :  { %26 = vsyncpa [#allocation6], 0 }
  0x15   :  { %28 = vsyncpa [#allocation6 + $0x1], 0  ;;  %s3344_s27 = smov 0   ;;  %s3346_s28 = smov 0  }
  0x16   :  { %s3348_s29 = smov 0   ;;  %s3350_s30 = smov 0  }
  0x17   :  { %s3352_s0 = smov 0   ;;  %s3354_s19 = smov 0  }
  0x18   :  { %s3356_s1 = smov 0   ;;  %s3358_s20 = smov 0  }
  0x19 LB: > { %3884 = sst [smem:[#allocation9_spill]] %s3211_s28  ;;  %s2574_s21 = sadd.s32 4294967295, %s3235_s20   ;;  %s3235_s20 = sphi %s3358_s20, %s34_s20   ;;  %s3231_s1 = sphi %s3356_s1, %s3931_s1   ;;  %s3227_s19 = sphi %s3354_s19, %s3930_s19   ;;  %s3223_s0 = sphi %s3352_s0, %s3929_s0   ;;  %s3219_s30 = sphi %s3350_s30, %s3928_s30   ;;  %s3215_s29 = sphi %s3348_s29, %s3927_s29   ;;  %s3211_s28 = sphi %s3346_s28, %s3926_s28   ;;  %s3207_s27 = sphi %s3344_s27, %s3925_s27  }
  0x1a   : > { %3885 = sst [smem:[#allocation10_spill]] %s3215_s29  ;;  %s43_s22 = sadd.s32 1, %s3227_s19 }
  0x1b   : > { %3886 = sst [smem:[#allocation11_spill]] %s3227_s19  ;;  %p44_p0 = scmp.ge.s32.totalorder %s43_s22, 2 }
  0x1c   : > { %3887 = sst [smem:[#allocation12_spill]] %s3231_s1  ;;  %s46_s2 = sadd.s32 1, %s3231_s1 }
  0x1d   : > { %3888 = sst [smem:[#allocation13_spill]] %s3235_s20  ;;  %s199_s23 = sadd.s32 1, %s3215_s29 }
  0x1e   : > { %p206_p1 = scmp.ne.s32.totalorder %s3215_s29, %s3211_s28  ;;  %s3933_s22 = smov (%p44_p0, %s43_s22), 0 }
  0x1f   : > { %3889 = sst [smem:[#allocation14_spill]] %s3933_s22  ;;  %s3935_s2 = smov (!%p44_p0, %s46_s2), %s3231_s1 }
  0x20   : > { %s196_s24 = ssub.s32 %s3227_s19, %s3933_s22  ;;  %p207_p2 = scmp.eq.s32.totalorder %s3235_s20, 0 }
  0x21   : > { %p48_p3 = scmp.ge.s32.totalorder %s3935_s2, 2  ;;  %p197_p4 = scmp.eq.s32.totalorder %s196_s24, 0 }
  0x22   : > { %p3394_p5 = por %p207_p2, %p206_p1  ;;  %p212_p6 = scmp.ne.s32.totalorder %s3211_s28, %s3207_s27 }
  0x23   : > { %s3937_s2 = smov (%p48_p3, %s3935_s2), 0  ;;  %p213_p7 = scmp.eq.s32.totalorder %s2574_s21, 0 }
  0x24   : > { %3891 = sst [smem:[#allocation15_spill]] %s3937_s2  ;;  %p2877_p8 = scmp.lt.s32.totalorder %s3235_s20, 4 }
  0x25   : > { %s3402_s26 = scalar_select %p197_p4, %s3215_s29, %s199_s23  }
  0x26   : > { %s3406_s17 = sand.u32 1, %s3215_s29   ;;  %p3408_p9 = por %p213_p7, %p212_p6 }
  0x27   : > { %3892 = sst [smem:[#allocation16_spill]] %s3402_s26  ;;  %s2578_s24 = sshll.u32 %s3406_s17, 6 }
  0x28   : > { %s2687_s1 = sshll.u32 %s3227_s19, 10  ;;  %s3894_s6 = sld [smem:[#allocation23_spill]] }
  0x29   : > { %s583_s18 = scalar_lea.vmem [#allocation3], %s2578_s24  ;;  %p3419_p10 = pnand %p2877_p8, %p3394_p5 }
  0x2a   : > { %s590_s2 = sshll.u32 %s583_s18, 4  ;;  %s580_s23 = scalar_lea.sflag [#allocation4], %s3406_s17  ;;  %s591_s2 = int_to_ptr.vmem [resolvable:$true] %s590_s2 }
  0x2b   : > { %p3111_p11 = pneg %p3419_p10  ;;  %s3122_s26 = scalar_lea.vmem %s591_s2, 1024 }
  0x2c   : > { %p3123_p12 = scmp.ne.s32.totalorder %s591_s2, %s3122_s26  ;;  %s3237_s3 = smov [#allocation3]  }
  0x2d   : > { %s3127_s16 = sshll.u32 %s3237_s3, 4  ;;  %s3128_s16 = int_to_ptr.vmem [resolvable:$false] %s3127_s16 }
  0x2e   : > { %s589_s27 = scalar_lea.hbm %s3894_s6, %s2687_s1  ;;  %p3125_p13 = pnand %p3123_p12, %p3111_p11 }
  0x2f   : > { %s3129_s18 = scalar_lea.vmem %s3128_s16, 2048  ;;  %p3130_p1 = scmp.lt.s32.totalorder %s591_s2, %s3128_s16 }
  0x30   : > { %p3126_p0 = pneg %p3125_p13  ;;  %p3131_p2 = scmp.lt.s32.totalorder %s3129_s18, %s3122_s26 }
  0x32   : > { %p3132_p3 = por %p3131_p2, %p3130_p1 }
  0x34   : > { %p3133_p4 = pnand %p3132_p3, %p3126_p0 }
  0x36   : > { %3136 = shalt.err (!%p3133_p4)
}
  0x37   : > { %s3238_s1 = smov 64   ;;  %s3239_s25 = smov 4  }
  0x38   : > { %2873 = dma.hbm_to_vmem [thread:$0]  (!%p3419_p10), %s589_s27, 1024, %s591_s2, %s580_s23, %s3238_s1, %s3238_s1, %s3239_s25  }
  0x39   : > { %p2584_p5 = scmp.ge.s32.totalorder %s3235_s20, 1  ;;  %p670_p6 = scmp.lt.s32.totalorder %s3235_s20, 5 }
  0x3a   : > { %s2581_s26 = sshll.u32 %s3406_s17, 7  ;;  %s2688_s3 = sshll.u32 %s3227_s19, 11 }
  0x3b   : > { %p3437_p7 = pnand %p2584_p5, %p670_p6  ;;  %s637_s16 = scalar_lea.vmem [#allocation5], %s2581_s26 }
  0x3c   : > { %s644_s18 = sshll.u32 %s637_s16, 4  ;;  %s3897_s12 = sld [smem:[#allocation27_spill]]  ;;  %s645_s18 = int_to_ptr.vmem [resolvable:$true] %s644_s18 }
  0x3d   : > { %s634_s14 = scalar_lea.sflag [#allocation6], %s3406_s17  ;;  %s3150_s13 = scalar_lea.vmem %s645_s18, 2048 }
  0x3e   : > { %p3151_p8 = scmp.ne.s32.totalorder %s645_s18, %s3150_s13  ;;  %s3240_s2 = smov [#allocation5]  }
  0x3f   : > { %s3155_s27 = sshll.u32 %s3240_s2, 4  ;;  %s3156_s27 = int_to_ptr.vmem [resolvable:$false] %s3155_s27 }
  0x40   : > { %p3153_p12 = pnand %p3151_p8, %p3111_p11  ;;  %s3157_s23 = scalar_lea.vmem %s3156_s27, 4096 }
  0x41   : > { %p3158_p0 = scmp.lt.s32.totalorder %s645_s18, %s3156_s27  ;;  %p3159_p1 = scmp.lt.s32.totalorder %s3157_s23, %s3150_s13 }
  0x42   : > { %s643_s15 = scalar_lea.hbm %s3897_s12, %s2688_s3  ;;  %p3154_p13 = pneg %p3153_p12 }
  0x43   : > { %p3160_p2 = por %p3159_p1, %p3158_p0 }
  0x45   : > { %p3161_p3 = pnand %p3160_p2, %p3154_p13 }
  0x47   : > { %3164 = shalt.err (!%p3161_p3)
}
  0x48   : > { %2876 = dma.hbm_to_vmem [thread:$0]  (!%p3419_p10), %s643_s15, 2048, %s645_s18, %s634_s14, %s3238_s1, %s3238_s1, %s3239_s25  }
  0x49   : > { %674 = sbr.rel (%p3437_p7) target bundleno = 3533 (0xdcd), region = 92  ;;  %s676_s6 = sand.u32 (!%p3437_p7), 1, %s3211_s28  }
  0x4a   : > { %s2585_s17 = sshll.u32 (!%p3437_p7), %s676_s6, 6  ;;  %s677_s29 = scalar_lea.sflag (!%p3437_p7), [#allocation4], %s676_s6 }
  0x4b   : > { %s3457_s26 = scalar_lea.vmem (!%p3437_p7), [#allocation3], %s2585_s17 }
  0x4e   : > { %3198 = dma.done.wait (%p3408_p9), %s677_s29, 1024  }
  0x4f   : > { %3200 = vsyncadd (%p3408_p9), %s677_s29, 4294966272  ;;  %s2586_s13 = sshll.u32 %s676_s6, 7  ;;  %s686_s21 = scalar_lea.sflag [#allocation6], %s676_s6 }
  0x50   : > { %s3463_s3 = scalar_lea.vmem [#allocation5], %s2586_s13 }
  0x51   : > { %3202 = dma.done.wait (%p3408_p9), %s686_s21, 2048  }
  0x52   : > { %3204 = vsyncadd (%p3408_p9), %s686_s21, 4294965248  ;;  %p789_p10 = scmp.lt.s32.totalorder %s3223_s0, 1  ;;  %p797_p11 = scmp.lt.s32.totalorder %s3219_s30, 1 }
  0x53   : > { %s3899_s2 = sld [smem:[#allocation17_spill]]  ;;  %p2593_p9 = scmp.ne.s32.totalorder %s3219_s30, 0 }
  0x54   : > { %s3939_s0 = smov (!%p789_p10, %s3223_s0), 1  ;;  %s3900_s4 = sld [smem:[#allocation21_spill]] }
  0x55   : > { %s3475_s14 = scalar_select %p797_p11, %s3219_s30, 1 }
  0x56   : > { %s2689_s15 = sshll.u32 %s3939_s0, 4  ;;  %s3902_s5 = sld [smem:[#allocation22_spill]] }
  0x57   : > { %s2864_s23 = smul.u32 192, %s3475_s14  ;;  %s2690_s17 = sshll.u32 %s3475_s14, 7 }
  0x58   : > { %s2865_s6 = smul.u32 3, %s3475_s14  ;;  %s2592_s29 = sshll.u32 %s3475_s14, 1 }
  0x59   : > { %s793_s27 = scalar_lea.vmem %s3899_s2, %s2689_s15  ;;  %s3904_s10 = sld [smem:[#allocation26_spill]] }
  0x5a   : > { %s3494_s19 = scalar_lea.vmem %s3900_s4, %s2864_s23  ;;  %s3519_s28 = scalar_lea.vmem %s3852_s11, %s2592_s29 }
  0x5b   : > { %s3906_s15 = sld [smem:[#allocation29_spill]] }
  0x5c   : > { %s3503_s16 = scalar_lea.vmem %s3902_s5, %s2865_s6  ;;  %s3905_s6 = sld [smem:[#allocation28_spill]] }
  0x5d   : > { %s3907_s9 = sld [smem:[#allocation30_spill]] }
  0x5e   : > { %s3910_s2 = sld [smem:[#allocation20_spill]] (!%p2593_p9) }
  0x5f   : > { %s3514_s12 = scalar_lea.vmem %s3904_s10, %s2690_s17  ;;  %s3908_s17 = sld [smem:[#allocation33_spill]] }
  0x61   : > { %s829_s18 = scalar_lea.vmem %s3906_s15, %s3475_s14  ;;  %840 = sbr.rel (%p2593_p9) target bundleno = 414 (0x19e), region = 104 }
  0x62   : > { %s826_s25 = scalar_lea.vmem %s3905_s6, %s3475_s14 }
  0x63   : > { %s832_s8 = scalar_lea.vmem %s3907_s9, %s3475_s14  ;;  %s3909_s9 = sld [smem:[#allocation19_spill]] (!%p2593_p9) }
  0x65   : > { %s835_s10 = scalar_lea.vmem %s3908_s17, %s3939_s0 }
  0x66   : > { %v841_v0 = vld [vmem:[%s793_s27] sm:$0xff]  ;;  %v842_v1 = vld [vmem:[%s793_s27 + $0x8] sm:$0xff] }
  0x67   : > { %845 = vadd.xlane.f32.xlu0 %v841_v0  ;;  %v2595_v19 = vld [vmem:[%s3910_s2] ss:$0 sm:$0xff] }
  0x69   : > { %v2594_v17 = vld [vmem:[%s3909_s9] ss:$0 sm:$0xff] }
  0x6b   : > { %847 = vadd.xlane.f32.xlu0 %v842_v1 }
  0xf0   : > { %v846_v2 = vpop.xlane.xlu0 %845 }
  0xf1   : > { %v850_v3 = vmul.f32 0.0078125, %v846_v2 }
  0xf3   : > { %v852_v4 = vsub.f32 %v841_v0, %v850_v3 }
  0xf4   : > { %v848_v5 = vpop.xlane.xlu0 %847 }
  0xf5   : > { %v851_v6 = vmul.f32 0.0078125, %v848_v5  ;;  %v854_v7 = vmul.f32 %v852_v4, %v852_v4 }
  0xf7   : > { %v853_v8 = vsub.f32 %v842_v1, %v851_v6  ;;  %856 = vadd.xlane.f32.xlu1 %v854_v7 }
  0xf9   : > { %v855_v9 = vmul.f32 %v853_v8, %v853_v8 }
  0xfb   : > { %858 = vadd.xlane.f32.xlu1 %v855_v9 }
 0x180   : > { %v857_v10 = vpop.xlane.xlu1 %856 }
 0x181   : > { %v860_v11 = vmul.f32 0.0078125, %v857_v10 }
 0x183   : > { %v862_v12 = vadd.f32 1e-05, %v860_v11 }
 0x184   : > { %v859_v13 = vpop.xlane.xlu1 %858 }
 0x185   : > { %2952 = vrsqrt.f32 %v862_v12  ;;  %v861_v14 = vmul.f32 0.0078125, %v859_v13 }
 0x187   : > { %v863_v15 = vadd.f32 1e-05, %v861_v14 }
 0x189   : > { %2954 = vrsqrt.f32 %v863_v15 }
 0x192   : > { %v2953_v16 = vpop.eup %2952 }
 0x193   : > { %v866_v18 = vmul.f32 %v2953_v16, %v852_v4 }
 0x195   : > { %v874_v20 = vmul.f32 %v2594_v17, %v866_v18 }
 0x196   : > { %v2955_v21 = vpop.eup %2954 }
 0x197   : > { %v882_v22 = vadd.f32 %v2595_v19, %v874_v20  ;;  %v867_v23 = vmul.f32 %v2955_v21, %v853_v8 }
 0x199   : > { %884 = vst [vmem:[#allocation2] sm:$0xff] %v882_v22  ;;  %v875_v24 = vmul.f32 %v2594_v17, %v867_v23 }
 0x19b   : > { %v883_v25 = vadd.f32 %v2595_v19, %v875_v24 }
 0x19d   : > { %885 = vst [vmem:[#allocation2 + $0x8] sm:$0xff] %v883_v25 }
 0x19e PF: > { %v2971_v26 = vld [vmem:[%s3494_s19 + $0xac] ss:$12 sps:$4 sm:$0xff]   ;;  %v2973_v27 = vld [vmem:[%s3494_s19 + $0xa8] ss:$12 sps:$4 sm:$0xff]   ;;  %v3241_v28 = vmov 0   ;;  %v3242_v29 = vmov 0.0   ;;  %v930_v55 = vlaneseq  ;;  %s3913_s15 = scalar_lea.vmem %s3848_s7, %s3475_s14 }
 0x19f   : > { %1105 = vmatprep.mubr.bf16.mxu0 %v3241_v28  ;;  %2756 = vmatprep.subr.bf16.mxu1 %v3242_v29  ;;  %v2974_v30 = vld [vmem:[%s3494_s19 + $0x94] ss:$12 sps:$4 sm:$0xff]   ;;  %v2976_v31 = vld [vmem:[%s3494_s19 + $0x90] ss:$12 sps:$4 sm:$0xff]   ;;  %v2979_v33 = vld [vmem:[%s3494_s19 + $0x78] ss:$12 sps:$4 sm:$0xff]  }
 0x1a0   : > { %1073 = vmatprep.subr.bf16.mxu0 %v2971_v26  ;;  %v2977_v32 = vld [vmem:[%s3494_s19 + $0x7c] ss:$12 sps:$4 sm:$0xff]   ;;  %v2980_v34 = vld [vmem:[%s3494_s19 + $0x64] ss:$12 sps:$4 sm:$0xff]   ;;  %v2982_v35 = vld [vmem:[%s3494_s19 + $0x60] ss:$12 sps:$4 sm:$0xff]  }
 0x1a1   : > { %1074 = vmatpush1.bf16.msra.mxu0 %v2973_v27  ;;  %v2983_v36 = vld [vmem:[%s3494_s19 + $0x4c] ss:$12 sps:$4 sm:$0xff]   ;;  %v2995_v37 = vld [vmem:[%s3494_s19 + $0xb0] ss:$12 sps:$4 sm:$0xff]   ;;  %v2985_v39 = vld [vmem:[%s3494_s19 + $0x48] ss:$12 sps:$4 sm:$0xff]  }
 0x1a2   : > { %1075 = vmatprep.subr.bf16.mxu0 %v2974_v30  ;;  %2757 = vmatpush3.bf16.msra.mxu1 %v2995_v37  ;;  %v2996_v38 = vld [vmem:[%s3494_s19 + $0x98] ss:$12 sps:$4 sm:$0xff]   ;;  %v2986_v40 = vld [vmem:[%s3494_s19 + $0x34] ss:$12 sps:$4 sm:$0xff]   ;;  %v2988_v41 = vld [vmem:[%s3494_s19 + $0x30] ss:$12 sps:$4 sm:$0xff]  }
 0x1a3   : > { %2758 = vmatprep.subr.bf16.mxu1 %v3242_v29  ;;  %v2989_v42 = vld [vmem:[%s3494_s19 + $0x1c] ss:$12 sps:$4 sm:$0xff]   ;;  %v2997_v43 = vld [vmem:[%s3494_s19 + $0x80] ss:$12 sps:$4 sm:$0xff]   ;;  %v2991_v45 = vld [vmem:[%s3494_s19 + $0x18] ss:$12 sps:$4 sm:$0xff]  }
 0x1a4   : > { %v2998_v44 = vld [vmem:[%s3494_s19 + $0x68] ss:$12 sps:$4 sm:$0xff]   ;;  %v2992_v46 = vld [vmem:[%s3494_s19 + $0x4] ss:$12 sps:$4 sm:$0xff]   ;;  %v2994_v48 = vld [vmem:[%s3494_s19] ss:$12 sps:$4 sm:$0xff]  }
 0x1a5   : > { %1076 = vmatpush1.bf16.msra.mxu0 %v2976_v31  ;;  %v2999_v47 = vld [vmem:[%s3494_s19 + $0x50] ss:$12 sps:$4 sm:$0xff]   ;;  %v3570_v49 = vld [vmem:[#allocation2] sm:$0xff]  ;;  %v3572_v50 = vld [vmem:[#allocation2 + $0x8] sm:$0xff]  ;;  %vm3243_vm0 = vmmov 0   ;;  %v3591_v56 = vshrl.u32 %v930_v55, 7 }
 0x1a6   : > { %1077 = vmatprep.subr.bf16.mxu0 %v2977_v32  ;;  %2759 = vmatpush3.bf16.msra.mxu1 %v2996_v38  ;;  %v3000_v51 = vld [vmem:[%s3494_s19 + $0x38] ss:$12 sps:$4 sm:$0xff]   ;;  %v895_v52 = vpack.c.bf16 %v3572_v50, %v3570_v49  ;;  %v3001_v53 = vld [vmem:[%s3494_s19 + $0x20] ss:$12 sps:$4 sm:$0xff]   ;;  %v3002_v54 = vld [vmem:[%s3494_s19 + $0x8] ss:$12 sps:$4 sm:$0xff]  }
 0x1a7   : > { %2760 = vmatprep.subr.bf16.mxu1 %v3242_v29  ;;  %2772 = vmatprep.mubr.msk.bf16.mxu1 %vm3243_vm0, %v3242_v29  ;;  %v936_v57 = vsub.s32 1, %v3591_v56  ;;  %v928_v59 = vld [vmem:[%s3503_s16] sm:$0x7]  ;;  %v932_v0 = vsub.s32 0, %v3591_v56  ;;  %vm1160_vm1 = vcmask 261120   ;;  %v940_v9 = vsub.s32 2, %v3591_v56 }
 0x1a8   : > { %s3911_s29 = sld [smem:[#allocation18_spill]]  ;;  %vm1212_vm2 = vcmask 130048   ;;  %s3244_s21 = smov 96   ;;  %vm1684_vm3 = vcmask 523264   ;;  %vm1687_vm4 = vcmask 785408  }
 0x1a9   : > { %1078 = vmatpush1.bf16.msra.mxu0 %v2979_v33  ;;  %v937_v61 = vrot.slane %v928_v59, %v936_v57  ;;  %v933_v4 = vrot.slane %v928_v59, %v932_v0  ;;  %v941_v10 = vrot.slane %v928_v59, %v940_v9  ;;  %s3245_s22 = smov 32   ;;  %s3246_s24 = smov 64  }
 0x1aa   : > { %1079 = vmatprep.subr.bf16.mxu0 %v2980_v34  ;;  %2761 = vmatpush3.bf16.msra.mxu1 %v2997_v43  ;;  %s3914_s17 = sld [smem:[#allocation24_spill]]  ;;  %p2675_p4 = scmp.ne.s32.totalorder %s3219_s30, 1 }
 0x1ab   : > { %2762 = vmatprep.subr.bf16.mxu1 %v3242_v29  ;;  %s3916_s9 = sld [smem:[#allocation25_spill]] }
 0x1ad   : > { %1080 = vmatpush1.bf16.msra.mxu0 %v2982_v35 }
 0x1ae   : > { %1081 = vmatprep.subr.bf16.mxu0 %v2983_v36  ;;  %2763 = vmatpush3.bf16.msra.mxu1 %v2998_v44  ;;  %s3912_s23 = scalar_lea.vmem %s3911_s29, %s3939_s0 }
 0x1af   : > { %2764 = vmatprep.subr.bf16.mxu1 %v3242_v29  ;;  %v3615_v19 = vld [vmem:[%s3912_s23] ss:$0 sm:$0xff] }
 0x1b1   : > { %1082 = vmatpush1.bf16.msra.mxu0 %v2985_v39  ;;  %s3917_s27 = scalar_lea.vmem %s3916_s9, %s3475_s14 }
 0x1b2   : > { %1083 = vmatprep.subr.bf16.mxu0 %v2986_v40  ;;  %2765 = vmatpush3.bf16.msra.mxu1 %v2999_v47 }
 0x1b3   : > { %2766 = vmatprep.subr.bf16.mxu1 %v3242_v29 }
 0x1b5   : > { %1084 = vmatpush1.bf16.msra.mxu0 %v2988_v41 }
 0x1b6   : > { %1085 = vmatprep.subr.bf16.mxu0 %v2989_v42  ;;  %2767 = vmatpush3.bf16.msra.mxu1 %v3000_v51 }
 0x1b7   : > { %2768 = vmatprep.subr.bf16.mxu1 %v3242_v29 }
 0x1b9   : > { %1086 = vmatpush1.bf16.msra.mxu0 %v2991_v45 }
 0x1ba   : > { %1087 = vmatprep.subr.bf16.mxu0 %v2992_v46  ;;  %2769 = vmatpush3.bf16.msra.mxu1 %v3001_v53 }
 0x1bb   : > { %2770 = vmatprep.subr.bf16.mxu1 %v3242_v29 }
 0x1bd   : > { %1088 = vmatpush1.bf16.msra.mxu0 %v2994_v48 }
 0x1be   : > { %2800 = vmatprep.subr.bf16.mxu0 %v3242_v29  ;;  %2771 = vmatpush3.bf16.msra.mxu1 %v3002_v54 }
 0x1bf   : > { %2776 = vmatprep.subr.bf16.mxu1 %v3242_v29 }
 0x1c0   : > { %1106 = vmatmul.mubr.bf16.vlgmr.msra.gmra.mxu0 %v895_v52 }
 0x1c1   : > { %2802 = vmatprep.mubr.msk.bf16.mxu0 %vm3243_vm0, %v3242_v29  ;;  %2773 = vmatmul.mubr.bf16.vlgmr.msra.gmra.mxu1 %v895_v52 }
 0x1c2   : > { %2778 = vmatprep.mubr.msk.bf16.mxu1 %vm3243_vm0, %v3242_v29 }
 0x280   : > { %v1107_v58 = vpop.f32.mrf.mxu0 }
 0x281   : > { %v1108_v7 = vadd.f32 %v1107_v58, %v933_v4  ;;  %v1150_v11 = vpop.f32.mrf.mxu1 }
 0x282   : > { %v1109_v60 = vpop.f32.mrf.mxu0  ;;  %v1151_v13 = vadd.f32 %v1150_v11, %v941_v10 }
 0x283   : > { %v1110_v1 = vadd.f32 %v1109_v60, %v937_v61  ;;  %v2774_v12 = vpop.f32.mrf.mxu1 }
 0x284   : > { %v1111_v62 = vpop.f32.mrf.mxu0 }
 0x285   : > { %v1112_v6 = vadd.f32 %v1111_v62, %v933_v4  ;;  %v1153_v14 = vpop.f32.mrf.mxu1 }
 0x286   : > { %v1113_v63 = vpop.f32.mrf.mxu0  ;;  %v1154_v15 = vadd.f32 %v1153_v14, %v941_v10 }
 0x287   : > { %v1114_v2 = vadd.f32 %v1113_v63, %v937_v61  ;;  %v1157_v8 = vpack.c.bf16 %v1112_v6, %v1108_v7  ;;  %v2775_v16 = vpop.f32.mrf.mxu1 }
 0x288   : > { %v3606_v17 = vpack.c.bf16 %v1154_v15, %v1151_v13 }
 0x289   : > { %v1158_v3 = vpack.c.bf16 %v1114_v2, %v1110_v1 }
 0x28b   : > { %v1165_v5 = vsel %vm1160_vm1, %v1158_v3, 0 }
 0x28c   : > { %2777 = vmatpush3.bf16.xpose.msra.mxu1 %v1165_v5 }
 0x28d   : > { %2782 = vmatprep.subr.bf16.mxu1 %v3242_v29 }
 0x293   : > { %2779 = vmatmul.mubr.msk.bf16.vlgmr.msra.gmra.mxu1 %vm1160_vm1, %v1157_v8 }
 0x294   : > { %2784 = vmatprep.mubr.msk.bf16.mxu1 %vm3243_vm0, %v3242_v29  ;;  %2783 = vmatpush3.bf16.msra.mxu1 %v3606_v17 }
 0x295   : > { %2788 = vmatprep.subr.bf16.mxu1 %v3242_v29 }
 0x353   : > { %v1201_v18 = vpop.f32.mrf.mxu1 }
 0x354   : > { %v1208_v20 = vmul.f32 0.17677669, %v1201_v18 }
 0x355   : > { %v2780_v21 = vpop.f32.mrf.mxu1 }
 0x356   : > { %v1210_v22 = vadd.f32 %v3615_v19, %v1208_v20 }
 0x357   : > { %v1204_v23 = vpop.f32.mrf.mxu1 }
 0x358   : > { %v1209_v24 = vmul.f32 0.17677669, %v1204_v23  ;;  %v1213_v25 = vsel %vm1212_vm2, %v1210_v22, -inf }
 0x359   : > { %1214 = vmax.xlane.f32.xlu0 %v1213_v25  ;;  %v2781_v26 = vpop.f32.mrf.mxu1 }
 0x35a   : > { %v1211_v27 = vadd.f32 %v3615_v19, %v1209_v24 }
 0x35c   : > { %v1216_v30 = vsel %vm1212_vm2, %v1211_v27, -inf }
 0x35d   : > { %1217 = vmax.xlane.f32.xlu0 %v1216_v30 }
 0x373   : > { %1284 = vrot.lane.b32.xlu0 %v1158_v3, %s3244_s21 }
 0x377   : > { %1535 = vrot.lane.b32.xlu0 %v1158_v3, %s3245_s22 }
 0x3e2   : > { %v1215_v31 = vpop.xlane.xlu0 %1214 }
 0x3e3   : > { %v1219_v32 = vsub.f32 %v1210_v22, %v1215_v31 }
 0x3e5   : > { %v1221_v33 = vmul.f32 1.442695, %v1219_v32 }
 0x3e6   : > { %v1218_v34 = vpop.xlane.xlu0 %1217 }
 0x3e7   : > { %3051 = vpow2.f32 %v1221_v33  ;;  %v1220_v35 = vsub.f32 %v1211_v27, %v1218_v34 }
 0x3e9   : > { %v1223_v36 = vmul.f32 1.442695, %v1220_v35 }
 0x3ea   : > { %v1285_v44 = vpop.permute.xlu0 %1284 }
 0x3eb   : > { %3053 = vpow2.f32 %v1223_v36  ;;  %v1290_v59 = vsel %vm1160_vm1, %v1285_v44, 0 }
 0x3ee   : > { %v1536_v51 = vpop.permute.xlu0 %1535 }
 0x3ef   : > { %v1541_v55 = vsel %vm1160_vm1, %v1536_v51, 0 }
 0x3f4   : > { %v3052_v37 = vpop.eup %3051 }
 0x3f5   : > { %v1225_v38 = vsel %vm1212_vm2, %v3052_v37, 0.0 }
 0x3f6   : > { %1226 = vadd.xlane.f32.xlu1 %v1225_v38 }
 0x3f8   : > { %v3054_v39 = vpop.eup %3053 }
 0x3f9   : > { %v1228_v40 = vsel %vm1212_vm2, %v3054_v39, 0.0 }
 0x3fa   : > { %1229 = vadd.xlane.f32.xlu1 %v1228_v40 }
 0x40b   : > { %1281 = vrot.lane.b32.xlu1 %v1157_v8, %s3244_s21 }
 0x40f   : > { %1410 = vrot.lane.b32.xlu1 %v1158_v3, %s3246_s24 }
 0x413   : > { %1408 = vrot.lane.b32.xlu1 %v1157_v8, %s3246_s24 }
 0x417   : > { %1533 = vrot.lane.b32.xlu1 %v1157_v8, %s3245_s22 }
 0x47f   : > { %v1227_v41 = vpop.xlane.xlu1 %1226 }
 0x480   : > { %3055 = vrcp.f32 %v1227_v41 }
 0x483   : > { %v1230_v42 = vpop.xlane.xlu1 %1229 }
 0x484   : > { %3057 = vrcp.f32 %v1230_v42 }
 0x487   : > { %v1282_v43 = vpop.permute.xlu1 %1281 }
 0x48b   : > { %v1411_v45 = vpop.permute.xlu1 %1410 }
 0x48c   : > { %v1416_v46 = vsel %vm1160_vm1, %v1411_v45, 0 }
 0x48d   : > { %2801 = vmatpush3.bf16.xpose.msra.mxu0 %v1416_v46  ;;  %v3056_v47 = vpop.eup %3055 }
 0x48e   : > { %2812 = vmatprep.subr.bf16.mxu0 %v3242_v29  ;;  %v1233_v52 = vmul.f32 %v3056_v47, %v3052_v37 }
 0x48f   : > { %v1409_v54 = vpop.permute.xlu1 %1408 }
 0x491   : > { %v3058_v48 = vpop.eup %3057 }
 0x492   : > { %v1234_v53 = vmul.f32 %v3058_v48, %v3054_v39 }
 0x493   : > { %v1534_v60 = vpop.permute.xlu1 %1533 }
 0x494   : > { %2803 = vmatmul.mubr.msk.bf16.vlgmr.msra.gmra.mxu0 %vm1160_vm1, %v1409_v54  ;;  %v1235_v58 = vpack.c.bf16 %v1234_v53, %v1233_v52 }
 0x495   : > { %2813 = vmatpush3.bf16.xpose.msra.mxu0 %v1541_v55  ;;  %2814 = vmatprep.mubr.msk.bf16.mxu0 %vm3243_vm0, %v3242_v29 }
 0x496   : > { %2785 = vmatmul.mubr.msk.bf16.vlgmr.msra.gmra.mxu1 %vm1212_vm2, %v1235_v58  ;;  %2824 = vmatprep.subr.bf16.mxu0 %v3242_v29 }
 0x497   : > { %2789 = vmatpush3.bf16.xpose.msra.mxu1 %v1290_v59  ;;  %2790 = vmatprep.mubr.msk.bf16.mxu1 %vm3243_vm0, %v3242_v29 }
 0x498   : > { %2794 = vmatprep.subr.bf16.mxu1 %v3242_v29 }
 0x49c   : > { %2815 = vmatmul.mubr.msk.bf16.vlgmr.msra.gmra.mxu0 %vm1160_vm1, %v1534_v60 }
 0x49d   : > { %2840 = vmatprep.mubr.msk.bf16.mxu0 %vm3243_vm0, %v3242_v29 }
 0x49e   : > { %2791 = vmatmul.mubr.msk.bf16.vlgmr.msra.gmra.mxu1 %vm1160_vm1, %v1282_v43 }
 0x49f   : > { %2796 = vmatprep.mubr.msk.bf16.mxu1 %vm3243_vm0, %v3242_v29 }
 0x554   : > { %v1452_v61 = vpop.f32.mrf.mxu0 }
 0x555   : > { %v1459_v7 = vmul.f32 0.17677669, %v1452_v61 }
 0x556   : > { %v3647_v62 = vpop.f32.mrf.mxu1  ;;  %v2804_v63 = vpop.f32.mrf.mxu0 }
 0x557   : > { %v1461_v18 = vadd.f32 %v3615_v19, %v1459_v7 }
 0x558   : > { %v2786_v1 = vpop.f32.mrf.mxu1  ;;  %v1455_v2 = vpop.f32.mrf.mxu0 }
 0x559   : > { %v1460_v14 = vmul.f32 0.17677669, %v1455_v2  ;;  %v1463_v25 = vsel %vm1212_vm2, %v1461_v18, -inf }
 0x55a   : > { %v3649_v3 = vpop.f32.mrf.mxu1  ;;  %v2805_v4 = vpop.f32.mrf.mxu0 }
 0x55b   : > { %v1462_v30 = vadd.f32 %v3615_v19, %v1460_v14 }
 0x55c   : > { %v2787_v5 = vpop.f32.mrf.mxu1  ;;  %v1577_v6 = vpop.f32.mrf.mxu0 }
 0x55d   : > { %v1584_v26 = vmul.f32 0.17677669, %v1577_v6  ;;  %v1466_v32 = vsel %vm1212_vm2, %v1462_v30, -inf }
 0x55e   : > { %v1326_v8 = vpop.f32.mrf.mxu1  ;;  %v2816_v9 = vpop.f32.mrf.mxu0 }
 0x55f   : > { %v1333_v10 = vmul.f32 0.17677669, %v1326_v8  ;;  %v1586_v34 = vadd.f32 %v3615_v19, %v1584_v26 }
 0x560   : > { %v2792_v11 = vpop.f32.mrf.mxu1  ;;  %v1580_v12 = vpop.f32.mrf.mxu0 }
 0x561   : > { %v1335_v13 = vadd.f32 %v3615_v19, %v1333_v10  ;;  %v1585_v20 = vmul.f32 0.17677669, %v1580_v12  ;;  %v1588_v35 = vsel %vm1212_vm2, %v1586_v34, -inf }
 0x562   : > { %v1329_v15 = vpop.f32.mrf.mxu1  ;;  %v2817_v16 = vpop.f32.mrf.mxu0 }
 0x563   : > { %v1334_v21 = vmul.f32 0.17677669, %v1329_v15  ;;  %v1337_v22 = vsel %vm1212_vm2, %v1335_v13, -inf  ;;  %v1587_v31 = vadd.f32 %v3615_v19, %v1585_v20 }
 0x564   : > { %1338 = vmax.xlane.f32.xlu0 %v1337_v22  ;;  %v2793_v23 = vpop.f32.mrf.mxu1 }
 0x565   : > { %v1336_v24 = vadd.f32 %v3615_v19, %v1334_v21  ;;  %v1591_v33 = vsel %vm1212_vm2, %v1587_v31, -inf }
 0x567   : > { %v1340_v27 = vsel %vm1212_vm2, %v1336_v24, -inf }
 0x568   : > { %1464 = vmax.xlane.f32.xlu0 %v1463_v25  ;;  %1341 = vmax.xlane.f32.xlu1 %v1340_v27 }
 0x56c   : > { %1467 = vmax.xlane.f32.xlu0 %v1466_v32  ;;  %1592 = vmax.xlane.f32.xlu1 %v1591_v33 }
 0x570   : > { %1589 = vmax.xlane.f32.xlu0 %v1588_v35  ;;  %v3003_v35 = vld [vmem:[%s3457_s26 + $0x38] sm:$0xff]  }
 0x571   : > { %2825 = vmatpush3.bf16.msra.mxu0 %v3003_v35  ;;  %v3017_v35 = vld [vmem:[%s3514_s12 + $0x50] ss:$8 sps:$4 sm:$0xff]  }
 0x572   : > { %2826 = vmatprep.subr.bf16.mxu0 %v3242_v29 }
 0x5ed   : > { %v1339_v36 = vpop.xlane.xlu0 %1338 }
 0x5ee   : > { %v1343_v45 = vsub.f32 %v1335_v13, %v1339_v36  ;;  %v3004_v36 = vld [vmem:[%s3457_s26 + $0x30] sm:$0xff]  }
 0x5ef   : > { %2827 = vmatpush3.bf16.msra.mxu0 %v3004_v36  ;;  %v3020_v36 = vld [vmem:[%s3514_s12 + $0x40] ss:$8 sps:$4 sm:$0xff]  }
 0x5f0   : > { %v1345_v52 = vmul.f32 1.442695, %v1343_v45  ;;  %2828 = vmatprep.subr.bf16.mxu0 %v3242_v29 }
 0x5f1   : > { %v1465_v37 = vpop.xlane.xlu0 %1464  ;;  %v1342_v38 = vpop.xlane.xlu1 %1341 }
 0x5f2   : > { %v1469_v39 = vsub.f32 %v1461_v18, %v1465_v37  ;;  %v1344_v46 = vsub.f32 %v1336_v24, %v1342_v38  ;;  %v3005_v37 = vld [vmem:[%s3457_s26 + $0x28] sm:$0xff]   ;;  %v3006_v38 = vld [vmem:[%s3457_s26 + $0x20] sm:$0xff]  }
 0x5f3   : > { %2829 = vmatpush3.bf16.msra.mxu0 %v3005_v37  ;;  %v3022_v37 = vld [vmem:[%s3514_s12 + $0x44] ss:$8 sps:$4 sm:$0xff]  }
 0x5f4   : > { %v1471_v40 = vmul.f32 1.442695, %v1469_v39  ;;  %v1347_v53 = vmul.f32 1.442695, %v1344_v46  ;;  %2830 = vmatprep.subr.bf16.mxu0 %v3242_v29  ;;  %v3007_v39 = vld [vmem:[%s3457_s26 + $0x18] sm:$0xff]  }
 0x5f5   : > { %v1468_v41 = vpop.xlane.xlu0 %1467  ;;  %v1593_v42 = vpop.xlane.xlu1 %1592 }
 0x5f6   : > { %3059 = vpow2.f32 %v1471_v40  ;;  %v1470_v43 = vsub.f32 %v1462_v30, %v1468_v41  ;;  %v1595_v44 = vsub.f32 %v1587_v31, %v1593_v42  ;;  %v3008_v41 = vld [vmem:[%s3457_s26 + $0x10] sm:$0xff]  }
 0x5f7   : > { %2831 = vmatpush3.bf16.msra.mxu0 %v3006_v38  ;;  %v3025_v38 = vld [vmem:[%s3514_s12 + $0x34] ss:$8 sps:$4 sm:$0xff]  }
 0x5f8   : > { %v1473_v47 = vmul.f32 1.442695, %v1470_v43  ;;  %v1598_v48 = vmul.f32 1.442695, %v1595_v44  ;;  %2832 = vmatprep.subr.bf16.mxu0 %v3242_v29  ;;  %v3009_v44 = vld [vmem:[%s3457_s26 + $0x8] sm:$0xff]  }
 0x5f9   : > { %v1590_v19 = vpop.xlane.xlu0 %1589 }
 0x5fa   : > { %3061 = vpow2.f32 %v1473_v47  ;;  %v1594_v51 = vsub.f32 %v1586_v34, %v1590_v19 }
 0x5fb   : > { %3063 = vpow2.f32 %v1598_v48  ;;  %2833 = vmatpush3.bf16.msra.mxu0 %v3007_v39  ;;  %v3010_v48 = vld [vmem:[%s3457_s26] sm:$0xff]  }
 0x5fc   : > { %v1596_v54 = vmul.f32 1.442695, %v1594_v51  ;;  %2834 = vmatprep.subr.bf16.mxu0 %v3242_v29  ;;  %v3023_v39 = vld [vmem:[%s3514_s12 + $0x30] ss:$8 sps:$4 sm:$0xff]  }
 0x5fe   : > { %3065 = vpow2.f32 %v1596_v54 }
 0x5ff   : > { %3067 = vpow2.f32 %v1345_v52  ;;  %2835 = vmatpush3.bf16.msra.mxu0 %v3008_v41  ;;  %v3031_v41 = vld [vmem:[%s3514_s12 + $0x14] ss:$8 sps:$4 sm:$0xff]  }
 0x600   : > { %3069 = vpow2.f32 %v1347_v53  ;;  %2836 = vmatprep.subr.bf16.mxu0 %v3242_v29 }
 0x603   : > { %v3060_v55 = vpop.eup %3059  ;;  %2837 = vmatpush3.bf16.msra.mxu0 %v3009_v44  ;;  %v3032_v44 = vld [vmem:[%s3514_s12] ss:$8 sps:$4 sm:$0xff]  }
 0x604   : > { %v1475_v58 = vsel %vm1212_vm2, %v3060_v55, 0.0  ;;  %2838 = vmatprep.subr.bf16.mxu0 %v3242_v29 }
 0x605   : > { %1476 = vadd.xlane.f32.xlu0 %v1475_v58 }
 0x607   : > { %v3062_v59 = vpop.eup %3061  ;;  %2839 = vmatpush3.bf16.msra.mxu0 %v3010_v48 }
 0x608   : > { %v1478_v60 = vsel %vm1212_vm2, %v3062_v59, 0.0  ;;  %v3064_v61 = vpop.eup %3063 }
 0x609   : > { %1479 = vadd.xlane.f32.xlu1 %v1478_v60  ;;  %v1603_v4 = vsel %vm1212_vm2, %v3064_v61, 0.0 }
 0x60b   : > { %v3066_v63 = vpop.eup %3065 }
 0x60c   : > { %v3068_v1 = vpop.eup %3067  ;;  %v1600_v2 = vsel %vm1212_vm2, %v3066_v63, 0.0 }
 0x60d   : > { %v3070_v5 = vpop.eup %3069  ;;  %1601 = vadd.xlane.f32.xlu0 %v1600_v2  ;;  %1604 = vadd.xlane.f32.xlu1 %v1603_v4  ;;  %v1349_v6 = vsel %vm1212_vm2, %v3068_v1, 0.0 }
 0x60e   : > { %v1352_v7 = vsel %vm1212_vm2, %v3070_v5, 0.0 }
 0x611   : > { %1350 = vadd.xlane.f32.xlu0 %v1349_v6  ;;  %1353 = vadd.xlane.f32.xlu1 %v1352_v7 }
 0x622   : > { %1486 = vrot.lane.b32.xlu1 %v3606_v17, %s3246_s24 }
 0x626   : > { %1611 = vrot.lane.b32.xlu1 %v3606_v17, %s3245_s22 }
 0x627   : > { %1361 = vrot.lane.b32.xlu0 %v3606_v17, %s3244_s21 }
 0x68e   : > { %v1477_v8 = vpop.xlane.xlu0 %1476 }
 0x692   : > { %v1480_v9 = vpop.xlane.xlu1 %1479 }
 0x696   : > { %v1602_v10 = vpop.xlane.xlu0 %1601  ;;  %v1605_v11 = vpop.xlane.xlu1 %1604 }
 0x69a   : > { %v1351_v12 = vpop.xlane.xlu0 %1350  ;;  %v1354_v13 = vpop.xlane.xlu1 %1353 }
 0x69b   : > { %3071 = vrcp.f32 %v1351_v12 }
 0x69c   : > { %3073 = vrcp.f32 %v1354_v13 }
 0x69d   : > { %3075 = vrcp.f32 %v1480_v9 }
 0x69e   : > { %v1362_v14 = vpop.permute.xlu0 %1361  ;;  %3077 = vrcp.f32 %v1477_v8  ;;  %v1487_v22 = vpop.permute.xlu1 %1486 }
 0x69f   : > { %2795 = vmatpush3.bf16.msra.mxu1 %v1362_v14  ;;  %3079 = vrcp.f32 %v1602_v10  ;;  %v2629_v14 = vld [vmem:[%s3913_s15] ss:$0 sm:$0xff] }
 0x6a0   : > { %2806 = vmatprep.subr.bf16.mxu1 %v3242_v29  ;;  %3081 = vrcp.f32 %v1605_v11 }
 0x6a2   : > { %v1612_v31 = vpop.permute.xlu1 %1611 }
 0x6a8   : > { %v3072_v15 = vpop.eup %3071 }
 0x6a9   : > { %v3074_v16 = vpop.eup %3073  ;;  %v1357_v18 = vmul.f32 %v3072_v15, %v3068_v1 }
 0x6aa   : > { %v1358_v17 = vmul.f32 %v3074_v16, %v3070_v5  ;;  %v3076_v21 = vpop.eup %3075 }
 0x6ab   : > { %v3078_v23 = vpop.eup %3077  ;;  %v1484_v24 = vmul.f32 %v3076_v21, %v3062_v59 }
 0x6ac   : > { %v1359_v20 = vpack.c.bf16 %v1358_v17, %v1357_v18  ;;  %v1483_v25 = vmul.f32 %v3078_v23, %v3060_v55  ;;  %v3080_v26 = vpop.eup %3079  ;;  %v3013_v23 = vld [vmem:[%s3514_s12 + $0x74] ss:$8 sps:$4 sm:$0xff]  }
 0x6ad   : > { %v3082_v30 = vpop.eup %3081  ;;  %v1608_v32 = vmul.f32 %v3080_v26, %v3066_v63 }
 0x6ae   : > { %2797 = vmatmul.mubr.msk.bf16.vlgmr.msra.gmra.mxu1 %vm1212_vm2, %v1359_v20  ;;  %v1485_v27 = vpack.c.bf16 %v1484_v24, %v1483_v25  ;;  %v1609_v33 = vmul.f32 %v3082_v30, %v3064_v61 }
 0x6af   : > { %2807 = vmatpush3.bf16.msra.mxu1 %v1487_v22  ;;  %2808 = vmatprep.mubr.msk.bf16.mxu1 %vm3243_vm0, %v3242_v29  ;;  %v3011_v22 = vld [vmem:[%s3514_s12 + $0x70] ss:$8 sps:$4 sm:$0xff]  }
 0x6b0   : > { %2818 = vmatprep.subr.bf16.mxu1 %v3242_v29  ;;  %v1610_v34 = vpack.c.bf16 %v1609_v33, %v1608_v32  ;;  %v3016_v32 = vld [vmem:[%s3514_s12 + $0x64] ss:$8 sps:$4 sm:$0xff]   ;;  %v3014_v33 = vld [vmem:[%s3514_s12 + $0x60] ss:$8 sps:$4 sm:$0xff]  }
 0x6b6   : > { %2809 = vmatmul.mubr.msk.bf16.vlgmr.msra.gmra.mxu1 %vm1212_vm2, %v1485_v27 }
 0x6b7   : > { %2819 = vmatpush3.bf16.msra.mxu1 %v1612_v31  ;;  %2820 = vmatprep.mubr.msk.bf16.mxu1 %vm3243_vm0, %v3242_v29 }
 0x6b8   : > { %1955 = vmatprep.subr.bf16.mxu1 %v3013_v23 }
 0x6be   : > { %2821 = vmatmul.mubr.msk.bf16.vlgmr.msra.gmra.mxu1 %vm1212_vm2, %v1610_v34  ;;  %v3019_v34 = vld [vmem:[%s3514_s12 + $0x54] ss:$8 sps:$4 sm:$0xff]  }
 0x6bf   : > { %1987 = vmatprep.mubr.bf16.mxu1 %v3241_v28  ;;  %1956 = vmatpush1.bf16.msra.mxu1 %v3011_v22 }
 0x6c0   : > { %1957 = vmatprep.subr.bf16.mxu1 %v3016_v32 }
 0x6c3   : > { %1958 = vmatpush1.bf16.msra.mxu1 %v3014_v33 }
 0x6c4   : > { %1959 = vmatprep.subr.bf16.mxu1 %v3019_v34 }
 0x6c7   : > { %1960 = vmatpush1.bf16.msra.mxu1 %v3017_v35 }
 0x6c8   : > { %1961 = vmatprep.subr.bf16.mxu1 %v3022_v37 }
 0x6cb   : > { %1962 = vmatpush1.bf16.msra.mxu1 %v3020_v36 }
 0x6cc   : > { %1963 = vmatprep.subr.bf16.mxu1 %v3025_v38 }
 0x6cf   : > { %1964 = vmatpush1.bf16.msra.mxu1 %v3023_v39 }
 0x76e   : > { %v1401_v28 = vpop.f32.mrf.mxu1 }
 0x770   : > { %v2798_v40 = vpop.f32.mrf.mxu1 }
 0x771   : > { %v3026_v40 = vld [vmem:[%s3514_s12 + $0x20] ss:$8 sps:$4 sm:$0xff]  }
 0x772   : > { %v1404_v42 = vpop.f32.mrf.mxu1 }
 0x773   : > { %v2956_v43 = vpack.i.bf16 %v1404_v42, %v1401_v28  ;;  %v3028_v28 = vld [vmem:[%s3514_s12 + $0x24] ss:$8 sps:$4 sm:$0xff]   ;;  %v3029_v42 = vld [vmem:[%s3514_s12 + $0x10] ss:$8 sps:$4 sm:$0xff]  }
 0x774   : > { %v2799_v45 = vpop.f32.mrf.mxu1  ;;  %1965 = vmatprep.subr.bf16.mxu1 %v3028_v28 }
 0x775   : > { %2957 = vrot.lane.b32.xlu1 %v2956_v43, %s3245_s22  ;;  %1966 = vmatpush1.bf16.msra.mxu1 %v3026_v40  ;;  %v3034_v43 = vld [vmem:[%s3514_s12 + $0x4] ss:$8 sps:$4 sm:$0xff]   ;;  %s3915_s12 = scalar_lea.vmem %s3914_s17, %s3475_s14 }
 0x776   : > { %v1526_v46 = vpop.f32.mrf.mxu1  ;;  %1967 = vmatprep.subr.bf16.mxu1 %v3031_v41 }
 0x778   : > { %v2810_v47 = vpop.f32.mrf.mxu1 }
 0x779   : > { %1968 = vmatpush1.bf16.msra.mxu1 %v3029_v42 }
 0x77a   : > { %v1529_v19 = vpop.f32.mrf.mxu1  ;;  %1969 = vmatprep.subr.bf16.mxu1 %v3034_v43 }
 0x77b   : > { %v2961_v51 = vpack.i.bf16 %v1529_v19, %v1526_v46 }
 0x77c   : > { %v2811_v52 = vpop.f32.mrf.mxu1 }
 0x77d   : > { %2962 = vrot.lane.b32.xlu0 %v2961_v51, %s3246_s24  ;;  %1970 = vmatpush1.bf16.msra.mxu1 %v3032_v44 }
 0x77e   : > { %v1651_v53 = vpop.f32.mrf.mxu1 }
 0x780   : > { %v2822_v54 = vpop.f32.mrf.mxu1 }
 0x781   : > { %v2638_v54 = vld [vmem:[%s3915_s12] ss:$0 sm:$0xff] }
 0x782   : > { %v1654_v55 = vpop.f32.mrf.mxu1 }
 0x783   : > { %v2966_v58 = vpack.i.bf16 %v1654_v55, %v1651_v53 }
 0x784   : > { %v2823_v59 = vpop.f32.mrf.mxu1 }
 0x785   : > { %2967 = vrot.lane.b32.xlu1 %v2966_v58, %s3244_s21 }
 0x7e7   : > { %v2958_v60 = vpop.permute.xlu1 %2957 }
 0x7e8   : > { %v2960_v63 = vunpack.i.h.bf16 %v2958_v60  ;;  %v2959_v1 = vunpack.i.l.bf16 %v2958_v60  ;;  %v2639_v60 = vld [vmem:[%s3917_s27] ss:$0 sm:$0xff] }
 0x7ea   : > { %v1683_v5 = vsel %vm1160_vm1, %v3649_v3, %v2960_v63  ;;  %v1682_v6 = vsel %vm1160_vm1, %v3647_v62, %v2959_v1 }
 0x7ef   : > { %v2963_v61 = vpop.permute.xlu0 %2962 }
 0x7f0   : > { %v2965_v29 = vunpack.i.h.bf16 %v2963_v61  ;;  %v2964_v2 = vunpack.i.l.bf16 %v2963_v61 }
 0x7f2   : > { %v1686_v9 = vsel %vm1684_vm3, %v1683_v5, %v2965_v29  ;;  %v1685_v10 = vsel %vm1684_vm3, %v1682_v6, %v2964_v2  ;;  %v3035_v2 = vld [vmem:[%s3463_s3 + $0x78] sm:$0xff]   ;;  %v3037_v5 = vld [vmem:[%s3463_s3 + $0x70] sm:$0xff]  }
 0x7f3   : > { %2725 = vmatprep.subr.bf16.mxu0 %v3035_v2  ;;  %v3038_v6 = vld [vmem:[%s3463_s3 + $0x30] sm:$0xff]  }
 0x7f7   : > { %v2968_v4 = vpop.permute.xlu1 %2967 }
 0x7f8   : > { %v2970_v7 = vunpack.i.h.bf16 %v2968_v4  ;;  %v2969_v8 = vunpack.i.l.bf16 %v2968_v4  ;;  %v3036_v4 = vld [vmem:[%s3463_s3 + $0x38] sm:$0xff]  }
 0x7fa   : > { %v1689_v11 = vsel %vm1687_vm4, %v1686_v9, %v2970_v7  ;;  %v1688_v12 = vsel %vm1687_vm4, %v1685_v10, %v2969_v8  ;;  %v3039_v7 = vld [vmem:[%s3463_s3 + $0x68] sm:$0xff]   ;;  %v3041_v9 = vld [vmem:[%s3463_s3 + $0x60] sm:$0xff]  }
 0x7fb   : > { %v1690_v13 = vpack.c.bf16 %v1689_v11, %v1688_v12  ;;  %v3040_v8 = vld [vmem:[%s3463_s3 + $0x28] sm:$0xff]   ;;  %v3042_v10 = vld [vmem:[%s3463_s3 + $0x20] sm:$0xff]   ;;  %v3043_v11 = vld [vmem:[%s3463_s3 + $0x58] sm:$0xff]  }
 0x7fc   : > { %v3044_v12 = vld [vmem:[%s3463_s3 + $0x18] sm:$0xff]  }
 0x7fd   : > { %2841 = vmatmul.mubr.bf16.vlgmr.msra.gmra.mxu0 %v1690_v13  ;;  %v3045_v13 = vld [vmem:[%s3463_s3 + $0x50] sm:$0xff]  }
 0x7fe   : > { %2726 = vmatpush3.bf16.msra.mxu0 %v3036_v4 }
 0x7ff   : > { %2727 = vmatprep.subr.bf16.mxu0 %v3037_v5 }
 0x802   : > { %2728 = vmatpush3.bf16.msra.mxu0 %v3038_v6 }
 0x803   : > { %2729 = vmatprep.subr.bf16.mxu0 %v3039_v7 }
 0x806   : > { %2730 = vmatpush3.bf16.msra.mxu0 %v3040_v8 }
 0x807   : > { %2731 = vmatprep.subr.bf16.mxu0 %v3041_v9 }
 0x80a   : > { %2732 = vmatpush3.bf16.msra.mxu0 %v3042_v10 }
 0x80b   : > { %2733 = vmatprep.subr.bf16.mxu0 %v3043_v11 }
 0x80e   : > { %2734 = vmatpush3.bf16.msra.mxu0 %v3044_v12 }
 0x80f   : > { %2735 = vmatprep.subr.bf16.mxu0 %v3045_v13 }
 0x8bd   : > { %v1796_v15 = vpop.f32.mrf.mxu0 }
 0x8be   : > { %v1797_v3 = vadd.f32 %v2629_v14, %v1796_v15  ;;  %v3047_v15 = vld [vmem:[%s3463_s3 + $0x48] sm:$0xff]  }
 0x8bf   : > { %v2842_v16 = vpop.f32.mrf.mxu0 }
 0x8c0   : > { %v1803_v62 = vadd.f32 %v1797_v3, %v3570_v49  ;;  %v3048_v3 = vld [vmem:[%s3463_s3 + $0x8] sm:$0xff]   ;;  %v3049_v16 = vld [vmem:[%s3463_s3 + $0x40] sm:$0xff]  }
 0x8c1   : > { %v1799_v18 = vpop.f32.mrf.mxu0 }
 0x8c2   : > { %v1800_v17 = vadd.f32 %v2629_v14, %v1799_v18  ;;  %1807 = vadd.xlane.f32.xlu0 %v1803_v62  ;;  %v3046_v14 = vld [vmem:[%s3463_s3 + $0x10] sm:$0xff]  }
 0x8c3   : > { %v2843_v20 = vpop.f32.mrf.mxu0  ;;  %2736 = vmatpush3.bf16.msra.mxu0 %v3046_v14  ;;  %v1863_v18 = vld [vmem:[%s3519_s28] sm:$0x3]  ;;  %s3922_s28 = sld [smem:[#allocation32_spill]] (!%p2675_p4) }
 0x8c4   : > { %v1804_v21 = vadd.f32 %v1800_v17, %v3572_v50  ;;  %2737 = vmatprep.subr.bf16.mxu0 %v3047_v15  ;;  %v1868_v17 = vrot.slane %v1863_v18, %v932_v0  ;;  %v1872_v20 = vrot.slane %v1863_v18, %v936_v57  ;;  %v2673_v14 = vld [vmem:[%s829_s18] ss:$0 sm:$0xff]  ;;  %s3921_s18 = sld [smem:[#allocation31_spill]] (!%p2675_p4) }
 0x8c6   : > { %1809 = vadd.xlane.f32.xlu1 %v1804_v21 }
 0x8c7   : > { %2738 = vmatpush3.bf16.msra.mxu0 %v3048_v3  ;;  %v2674_v3 = vld [vmem:[%s832_s8] ss:$0 sm:$0xff] }
 0x8c8   : > { %2739 = vmatprep.subr.bf16.mxu0 %v3049_v16 }
 0x94b   : > { %v1808_v24 = vpop.xlane.xlu0 %1807 }
 0x94c   : > { %v1812_v25 = vmul.f32 0.0078125, %v1808_v24 }
 0x94e   : > { %v1814_v26 = vsub.f32 %v1803_v62, %v1812_v25  ;;  %v3050_v62 = vld [vmem:[%s3463_s3] sm:$0xff]  }
 0x94f   : > { %v1810_v49 = vpop.xlane.xlu1 %1809  ;;  %2740 = vmatpush3.bf16.msra.mxu0 %v3050_v62 }
 0x950   : > { %v1813_v27 = vmul.f32 0.0078125, %v1810_v49  ;;  %v1816_v30 = vmul.f32 %v1814_v26, %v1814_v26 }
 0x952   : > { %v1815_v31 = vsub.f32 %v1804_v21, %v1813_v27  ;;  %1818 = vadd.xlane.f32.xlu0 %v1816_v30 }
 0x954   : > { %v1817_v50 = vmul.f32 %v1815_v31, %v1815_v31 }
 0x956   : > { %1820 = vadd.xlane.f32.xlu0 %v1817_v50 }
 0x9db   : > { %v1819_v45 = vpop.xlane.xlu0 %1818 }
 0x9dc   : > { %v1822_v46 = vmul.f32 0.0078125, %v1819_v45 }
 0x9de   : > { %v1824_v47 = vadd.f32 1e-05, %v1822_v46 }
 0x9df   : > { %v1821_v48 = vpop.xlane.xlu0 %1820 }
 0x9e0   : > { %3083 = vrsqrt.f32 %v1824_v47  ;;  %v1823_v19 = vmul.f32 0.0078125, %v1821_v48  ;;  %v2656_v48 = vld [vmem:[%s826_s25] ss:$0 sm:$0xff] }
 0x9e2   : > { %v1825_v51 = vadd.f32 1e-05, %v1823_v19 }
 0x9e4   : > { %3085 = vrsqrt.f32 %v1825_v51 }
 0x9ed   : > { %v3084_v52 = vpop.eup %3083 }
 0x9ee   : > { %v1828_v53 = vmul.f32 %v3084_v52, %v1814_v26 }
 0x9f0   : > { %v1836_v59 = vmul.f32 %v2638_v54, %v1828_v53 }
 0x9f1   : > { %v3086_v55 = vpop.eup %3085 }
 0x9f2   : > { %v1829_v58 = vmul.f32 %v3086_v55, %v1815_v31  ;;  %v3740_v63 = vadd.f32 %v2639_v60, %v1836_v59 }
 0x9f4   : > { %v1837_v61 = vmul.f32 %v2638_v54, %v1829_v58 }
 0x9f6   : > { %v3742_v1 = vadd.f32 %v2639_v60, %v1837_v61 }
 0x9f8   : > { %v1846_v29 = vpack.c.bf16 %v3742_v1, %v3740_v63 }
 0x9fa   : > { %1988 = vmatmul.mubr.bf16.vlgmr.msra.gmra.mxu1 %v1846_v29 }
 0xaba   : > { %v1989_v21 = vpop.f32.mrf.mxu1 }
 0xabb   : > { %v1990_v22 = vadd.f32 %v1989_v21, %v1868_v17 }
 0xabc   : > { %v1991_v23 = vpop.f32.mrf.mxu1 }
 0xabd   : > { %v1992_v24 = vadd.f32 %v1991_v23, %v1872_v20  ;;  %v2002_v25 = vmul.f32 0.70710677, %v1990_v22  ;;  %v1998_v40 = vmul.f32 0.5, %v1990_v22 }
 0xabe   : > { %v1993_v26 = vpop.f32.mrf.mxu1 }
 0xabf   : > { %v2003_v49 = vmul.f32 0.70710677, %v1992_v24  ;;  %v1994_v27 = vadd.f32 %v1993_v26, %v1868_v17  ;;  %v1999_v38 = vmul.f32 0.5, %v1992_v24 }
 0xac0   : > { %v1995_v30 = vpop.f32.mrf.mxu1 }
 0xac1   : > { %3087 = verf.f32 %v2003_v49  ;;  %v2004_v31 = vmul.f32 0.70710677, %v1994_v27  ;;  %v1996_v50 = vadd.f32 %v1995_v30, %v1872_v20  ;;  %v2000_v37 = vmul.f32 0.5, %v1994_v27 }
 0xac2   : > { %3089 = verf.f32 %v2002_v25 }
 0xac3   : > { %3091 = verf.f32 %v2004_v31  ;;  %v2005_v32 = vmul.f32 0.70710677, %v1996_v50  ;;  %v2001_v39 = vmul.f32 0.5, %v1996_v50 }
 0xac5   : > { %3093 = verf.f32 %v2005_v32 }
 0xace   : > { %v3088_v0 = vpop.eup %3087 }
 0xacf   : > { %v3090_v33 = vpop.eup %3089  ;;  %v2011_v57 = vadd.f32 1.0, %v3088_v0 }
 0xad0   : > { %v3092_v56 = vpop.eup %3091  ;;  %v2010_v36 = vadd.f32 1.0, %v3090_v33 }
 0xad1   : > { %v2012_v34 = vadd.f32 1.0, %v3092_v56  ;;  %v2015_v42 = vmul.f32 %v2011_v57, %v1999_v38 }
 0xad2   : > { %v3094_v35 = vpop.eup %3093  ;;  %v2014_v44 = vmul.f32 %v2010_v36, %v1998_v40 }
 0xad3   : > { %v2013_v28 = vadd.f32 1.0, %v3094_v35  ;;  %v2016_v41 = vmul.f32 %v2012_v34, %v2000_v37 }
 0xad5   : > { %v2017_v43 = vmul.f32 %v2013_v28, %v2001_v39  ;;  %v2018_v46 = vpack.c.bf16 %v2016_v41, %v2014_v44 }
 0xad7   : > { %v2019_v45 = vpack.c.bf16 %v2017_v43, %v2015_v42 }
 0xad9   : > { %2187 = vmatprep.mubr.bf16.mxu0 %v2019_v45 }
 0xada   : > { %2188 = vmatmul.mubr.bf16.vlgmr.msra.gmra.mxu0 %v2018_v46 }
 0xb9a   : > { %v2741_v47 = vpop.f32.mrf.mxu0 }
 0xb9c   : > { %v2742_v19 = vpop.f32.mrf.mxu0 }
 0xb9d   : > { %v2743_v51 = vadd.f32 %v2742_v19, %v2741_v47 }
 0xb9e   : > { %v2744_v52 = vpop.f32.mrf.mxu0 }
 0xb9f   : > { %v2190_v53 = vadd.f32 %v2743_v51, %v2656_v48 }
 0xba0   : > { %v2745_v54 = vpop.f32.mrf.mxu0 }
 0xba1   : > { %v2746_v55 = vadd.f32 %v2745_v54, %v2744_v52  ;;  %v2196_v58 = vadd.f32 %v2190_v53, %v3740_v63 }
 0xba3   : > { %v2193_v59 = vadd.f32 %v2746_v55, %v2656_v48  ;;  %2200 = vadd.xlane.f32.xlu0 %v2196_v58 }
 0xba5   : > { %v2197_v60 = vadd.f32 %v2193_v59, %v3742_v1 }
 0xba7   : > { %2202 = vadd.xlane.f32.xlu1 %v2197_v60 }
 0xc2c   : > { %v2201_v61 = vpop.xlane.xlu0 %2200 }
 0xc2d   : > { %v2204_v29 = vmul.f32 0.0078125, %v2201_v61 }
 0xc2f   : > { %v2206_v2 = vsub.f32 %v2196_v58, %v2204_v29 }
 0xc30   : > { %v2203_v4 = vpop.xlane.xlu1 %2202 }
 0xc31   : > { %v2205_v5 = vmul.f32 0.0078125, %v2203_v4  ;;  %v2208_v6 = vmul.f32 %v2206_v2, %v2206_v2 }
 0xc33   : > { %v2207_v7 = vsub.f32 %v2197_v60, %v2205_v5  ;;  %2210 = vadd.xlane.f32.xlu0 %v2208_v6 }
 0xc35   : > { %v2209_v8 = vmul.f32 %v2207_v7, %v2207_v7 }
 0xc37   : > { %2212 = vadd.xlane.f32.xlu1 %v2209_v8 }
 0xcbc   : > { %v2211_v9 = vpop.xlane.xlu0 %2210 }
 0xcbd   : > { %v2214_v10 = vmul.f32 0.0078125, %v2211_v9 }
 0xcbf   : > { %v2216_v63 = vadd.f32 1e-05, %v2214_v10 }
 0xcc0   : > { %v2213_v11 = vpop.xlane.xlu1 %2212 }
 0xcc1   : > { %3095 = vrsqrt.f32 %v2216_v63  ;;  %v2215_v12 = vmul.f32 0.0078125, %v2213_v11 }
 0xcc3   : > { %v2217_v1 = vadd.f32 1e-05, %v2215_v12 }
 0xcc5   : > { %3097 = vrsqrt.f32 %v2217_v1 }
 0xcce   : > { %v3096_v13 = vpop.eup %3095 }
 0xccf   : > { %v2220_v15 = vmul.f32 %v3096_v13, %v2206_v2 }
 0xcd1   : > { %v2228_v16 = vmul.f32 %v2673_v14, %v2220_v15 }
 0xcd2   : > { %v3098_v62 = vpop.eup %3097 }
 0xcd3   : > { %v2236_v18 = vadd.f32 %v2674_v3, %v2228_v16  ;;  %v2221_v17 = vmul.f32 %v3098_v62, %v2207_v7 }
 0xcd5   : > { %2238 = vst [vmem:[#allocation2] sm:$0xff] %v2236_v18  ;;  %v2229_v20 = vmul.f32 %v2673_v14, %v2221_v17  ;;  %2243 = sbr.rel (%p2675_p4) target bundleno = 3533 (0xdcd), region = 108 }
 0xcd7   : > { %v2237_v21 = vadd.f32 %v2674_v3, %v2229_v20 }
 0xcd9   : > { %2239 = vst [vmem:[#allocation2 + $0x8] sm:$0xff] %v2237_v21 }
 0xcda   : > { %v3099_v22 = vld [vmem:[%s3921_s18 + $0x38] sm:$0xff]   ;;  %v3247_v23 = vmov 0.0   ;;  %v3100_v24 = vld [vmem:[%s3921_s18 + $0x30] sm:$0xff]   ;;  %vm3248_vm5 = vmmov 0   ;;  %v3101_v25 = vld [vmem:[%s3921_s18 + $0x28] sm:$0xff]   ;;  %v2244_v50 = vpack.c.bf16 %v2236_v18, %v2236_v18 }
 0xcdb   : > { %2844 = vmatprep.subr.bf16.mxu0 %v3247_v23  ;;  %2860 = vmatprep.mubr.msk.bf16.mxu0 %vm3248_vm5, %v3247_v23  ;;  %v3102_v26 = vld [vmem:[%s3921_s18 + $0x20] sm:$0xff]   ;;  %v3103_v49 = vld [vmem:[%s3921_s18 + $0x18] sm:$0xff]   ;;  %v3104_v27 = vld [vmem:[%s3921_s18 + $0x10] sm:$0xff]  }
 0xcdc   : > { %2845 = vmatpush3.bf16.msra.mxu0 %v3099_v22  ;;  %v3105_v30 = vld [vmem:[%s3921_s18 + $0x8] sm:$0xff]   ;;  %v3106_v31 = vld [vmem:[%s3921_s18] sm:$0xff]  }
 0xcdd   : > { %2846 = vmatprep.subr.bf16.mxu0 %v3247_v23  ;;  %v2676_v32 = vld [vmem:[%s3922_s28] ss:$0 sm:$0xff] }
 0xce0   : > { %2847 = vmatpush3.bf16.msra.mxu0 %v3100_v24 }
 0xce1   : > { %2848 = vmatprep.subr.bf16.mxu0 %v3247_v23 }
 0xce4   : > { %2849 = vmatpush3.bf16.msra.mxu0 %v3101_v25 }
 0xce5   : > { %2850 = vmatprep.subr.bf16.mxu0 %v3247_v23 }
 0xce8   : > { %2851 = vmatpush3.bf16.msra.mxu0 %v3102_v26 }
 0xce9   : > { %2852 = vmatprep.subr.bf16.mxu0 %v3247_v23 }
 0xcec   : > { %2853 = vmatpush3.bf16.msra.mxu0 %v3103_v49 }
 0xced   : > { %2854 = vmatprep.subr.bf16.mxu0 %v3247_v23 }
 0xcf0   : > { %2855 = vmatpush3.bf16.msra.mxu0 %v3104_v27 }
 0xcf1   : > { %2856 = vmatprep.subr.bf16.mxu0 %v3247_v23 }
 0xcf4   : > { %2857 = vmatpush3.bf16.msra.mxu0 %v3105_v30 }
 0xcf5   : > { %2858 = vmatprep.subr.bf16.mxu0 %v3247_v23 }
 0xcf8   : > { %2859 = vmatpush3.bf16.msra.mxu0 %v3106_v31 }
 0xcfb   : > { %2861 = vmatmul.mubr.bf16.vlgmr.msra.gmra.mxu0 %v2244_v50 }
 0xdbb   : > { %v2350_v0 = vpop.f32.mrf.mxu0 }
 0xdbc   : > { %v2351_v33 = vadd.f32 %v2676_v32, %v2350_v0 }
 0xdbd   : > { %v2862_v56 = vpop.f32.mrf.mxu0 }
 0xdbe   : > { %3107 = vtanh.f32 %v2351_v33 }
 0xdbf   : > { %v2353_v57 = vpop.f32.mrf.mxu0 }
 0xdc1   : > { %v2863_v34 = vpop.f32.mrf.mxu0 }
 0xdcb   : > { %v3108_v35 = vpop.eup %3107 }
 0xdcc   : > { %2357 = vst [vmem:[%s835_s10] sm:$0x1] %v3108_v35 }
 0xdcd PF: > { %s3924_s19 = sld [smem:[#allocation13_spill]] }
 0xdce   : > { %s3925_s27 = sld [smem:[#allocation9_spill]] }
 0xdcf   : > { %s3926_s28 = sld [smem:[#allocation10_spill]] }
 0xdd0   : > { %s3927_s29 = sld [smem:[#allocation16_spill]] }
 0xdd1   : > { %s3928_s30 = sld [smem:[#allocation11_spill]] }
 0xdd2   : > { %s3929_s0 = sld [smem:[#allocation12_spill]] }
 0xdd3   : > { %s34_s20 = sadd.s32 1, %s3924_s19   ;;  %s3930_s19 = sld [smem:[#allocation14_spill]] }
 0xdd4   : > { %p31_p5 = scmp.ge.s32.totalorder %s34_s20, 6   ;;  %s3931_s1 = sld [smem:[#allocation15_spill]] }
 0xdd6   :  { %33 = sbr.rel (!%p31_p5) target bundleno = 25 (0x19), region = 189 }
 0xddb   :  { %2375 = vsyncpa [#allocation4], 1 }
 0xddc   :  { %2377 = vsyncpa [#allocation4 + $0x1], 1 }
 0xddd   :  { %2378 = vsyncpa [#allocation6], 1 }
 0xdde   :  { %2380 = vsyncpa [#allocation6 + $0x1], 1 }

</bundles_post_ra>
